<compile_context>
chip_gen: v7x
topology: tpu7x:2x2x1
jax: 0.10.0
libtpu: 0.0.40
codegen_flags: <defaults>
</compile_context>

<pallas_src>
import functools

import jax
import jax.numpy as jnp
from jax.experimental import pallas as pl
from jax.experimental.pallas import tpu as pltpu


def _round_up(a, b):
    return -(-a // b) * b


def _resnet_block_kernel(x_ref, w1_ref, b1_ref, w2_ref, b2_ref, ws_ref, mask_ref,
                         o_ref, y_ref, h_ref, stk_ref, *,
                         C, C2, H, Wp, pw, k, dil, eps, neg_slope,
                         identity_shortcut, chunk):
    """One batch element, lane-dense flattened-spatial layout.

    x_ref   : (C, H*Wp)   f32 input, each row right-padded with 2*pw zero cols
    w1_ref  : (C, k*k*C)  bf16 conv1 weights (K is tap-major, in-channel-minor)
    w2_ref  : (C2, k*k*C) bf16 conv2 weights
    ws_ref  : (C2, C)     bf16 1x1 shortcut weights (unused when identity)
    mask_ref: (1, H*Wp)   1.0 on valid columns, 0.0 on over-wide pad columns
    o_ref   : (C2, H*Wp)  f32 over-wide output (wrapper strips pad columns)
    y_ref   : (C, L)      bf16 scratch: zero-padded, instance-normalized plane
                          (flattened, row stride Wp) — reused by both norms
    h_ref   : (C, H*Wp)   f32 scratch: masked conv1 activations
    stk_ref : (k*k*C, chunk) bf16 scratch: gathered tap stack for the fused dot
    """
    f32 = jnp.float32
    bf16 = jnp.bfloat16
    HWp = H * Wp
    Np = float((H + 2 * pw) * Wp)            # element count of the padded plane
    L = y_ref.shape[1]
    off0 = pw * Wp + pw                      # flat offset of padded-plane interior
    taps = [(t // k) * dil * Wp + (t % k) * dil for t in range(k * k)]
    pre, suf = off0, L - off0 - HWp

    def fill_plane(values_f32, border_bf16):
        # Border prefix/suffix only: the in-row zero pad columns inside the
        # interior store already normalize to the border value.
        if pre > 0:
            y_ref[:, pl.ds(0, pre)] = jnp.broadcast_to(border_bf16, (C, pre))
        if suf > 0:
            y_ref[:, pl.ds(off0 + HWp, suf)] = jnp.broadcast_to(border_bf16, (C, suf))
        y_ref[:, pl.ds(off0, HWp)] = values_f32.astype(bf16)

    def conv(w_ref, epilogue):
        # Fused K = k*k*C contraction per spatial chunk: gather the k*k shifted
        # row-slices of the normalized plane into stk_ref, then one MXU dot.
        # TODO(synk): tap offsets are not 128-aligned; rounding Wp up to 128 (or
        # pre-shifting via pltpu.roll) would remove the residual relayouts.
        for cs in range(0, HWp, chunk):
            n = min(chunk, HWp - cs)
            for t, off in enumerate(taps):
                stk_ref[pl.ds(t * C, C), pl.ds(0, n)] = y_ref[:, pl.ds(off + cs, n)]
            acc = jnp.dot(w_ref[...], stk_ref[:, pl.ds(0, n)],
                          preferred_element_type=f32)
            epilogue(cs, n, acc)

    # ---------- InstanceNorm #1 over the zero-padded input plane ----------
    x = x_ref[...]                           # pad columns are exact zeros
    mean1 = jnp.sum(x, axis=1, keepdims=True) / Np
    var1 = jnp.maximum(jnp.sum(x * x, axis=1, keepdims=True) / Np - mean1 * mean1, 0.0)
    inv1 = jax.lax.rsqrt(var1 + eps)
    fill_plane((x - mean1) * inv1, (-mean1 * inv1).astype(bf16))
    # x goes dead here; the shortcut re-reads x_ref per chunk.

    # ---------- conv1 + bias + LeakyReLU (chunked, bf16 operands) ----------
    def conv1_tail(cs, n, acc):
        acc = acc + b1_ref[...]
        acc = jnp.where(acc >= 0, acc, neg_slope * acc)            # LeakyReLU(0.2)
        h_ref[:, pl.ds(cs, n)] = acc * mask_ref[:, pl.ds(cs, n)]   # zero garbage cols

    conv(w1_ref, conv1_tail)

    # ---------- InstanceNorm #2 over the zero-padded hidden plane ----------
    hm = h_ref[...]
    mean2 = jnp.sum(hm, axis=1, keepdims=True) / Np
    var2 = jnp.maximum(jnp.sum(hm * hm, axis=1, keepdims=True) / Np - mean2 * mean2, 0.0)
    inv2 = jax.lax.rsqrt(var2 + eps)
    fill_plane((hm - mean2) * inv2, (-mean2 * inv2).astype(bf16))  # masked cols -> border

    # ---------- conv2 + bias + shortcut (chunked) ----------
    def conv2_tail(cs, n, acc):
        acc = acc + b2_ref[...]
        if identity_shortcut:
            acc = acc + x_ref[:, pl.ds(cs, n)]
        else:
            acc = acc + jnp.dot(ws_ref[...], x_ref[:, pl.ds(cs, n)].astype(bf16),
                                preferred_element_type=f32)
        o_ref[:, pl.ds(cs, n)] = acc.astype(o_ref.dtype)

    conv(w2_ref, conv2_tail)


def resnet_block(x, params, *, dim, dim2=None, kernel_size=3, dilation=1,
                 eps=1e-5, neg_slope=0.2, chunk_cols=512):
    N, C, H, W = x.shape
    assert C == dim
    identity = dim2 is None
    C2 = dim if identity else dim2
    k, dil = kernel_size, dilation
    pw = (k - 1) // 2 + (dil - 1)
    assert 2 * pw == (k - 1) * dil, "kernel assumes 'same'-size conv output (true for kernel_size=3)"

    Wp = W + 2 * pw
    HWp = H * Wp
    off0 = pw * Wp + pw
    # Flat scratch length: covers the padded plane plus the largest tap slice.
    L = max(HWp + (k - 1) * dil * (Wp + 1), off0 + HWp)
    L = _round_up(L, 128)
    chunk = min(chunk_cols, HWp)

    # Pad channels to bf16 sublane-tile multiples (zeros are inert through norm/conv).
    Cp = _round_up(C, 16)
    C2p = _round_up(C2, 16)
    K1 = k * k * Cp

    # Lane-dense staging: right-pad width by 2*pw zeros, flatten spatial.
    xf = jnp.pad(x.astype(jnp.float32),
                 ((0, 0), (0, Cp - C), (0, 0), (0, 2 * pw))).reshape(N, Cp, HWp)

    def prep_w(w, co, ci):   # (O, I, k, k) -> (co, k*k*ci) bf16, tap-major K
        O, I = w.shape[0], w.shape[1]
        wt = jnp.transpose(w.astype(jnp.float32), (2, 3, 0, 1))     # (kh, kw, O, I)
        wt = jnp.pad(wt, ((0, 0), (0, 0), (0, co - O), (0, ci - I)))
        wt = jnp.transpose(wt, (2, 0, 1, 3)).reshape(co, k * k * ci)
        return wt.astype(jnp.bfloat16)

    w1 = prep_w(params["w1"], Cp, Cp)
    w2 = prep_w(params["w2"], C2p, Cp)
    b1 = jnp.pad(params["b1"].astype(jnp.float32), (0, Cp - C)).reshape(Cp, 1)
    b2 = jnp.pad(params["b2"].astype(jnp.float32), (0, C2p - C2)).reshape(C2p, 1)
    if identity:
        ws = jnp.zeros((C2p, Cp), jnp.bfloat16)     # never read in the kernel
    else:
        ws = jnp.pad(params["ws"].reshape(C2, C).astype(jnp.float32),
                     ((0, C2p - C2), (0, Cp - C))).astype(jnp.bfloat16)
    mask = jnp.tile((jnp.arange(Wp) < W).astype(jnp.float32), H).reshape(1, HWp)

    kernel = functools.partial(
        _resnet_block_kernel, C=Cp, C2=C2p, H=H, Wp=Wp, pw=pw, k=k, dil=dil,
        eps=eps, neg_slope=neg_slope, identity_shortcut=identity, chunk=chunk)

    # Accurate VMEM budget: double-buffered pipelined blocks, single-buffered
    # scratch, 1.4x headroom + 2 MiB for compiler temporaries, capped below
    # v7x's 64 MiB physical VMEM.
    nbytes = (2 * Cp * HWp * 4                       # x block (double-buffered)
              + 2 * C2p * HWp * 4                    # output block
              + 2 * (Cp * K1 + C2p * K1 + C2p * Cp) * 2   # bf16 weights
              + 2 * (Cp + C2p) * 128 * 4             # biases (lane-padded)
              + 2 * HWp * 4                          # mask
              + Cp * L * 2 + Cp * HWp * 4 + K1 * chunk * 2)   # scratch
    vmem_limit = int(min(56 * 2 ** 20,
                         max(8 * 2 ** 20, int(1.4 * nbytes) + (2 << 20))))

    # TODO(synk): for N=1 inference on v7x, a second parallel grid axis (e.g.
    # spatial-row tiles with a two-pass InstanceNorm) would feed both TCs.
    out_wide = pl.pallas_call(
        kernel,
        out_shape=jax.ShapeDtypeStruct((N, C2p, HWp), jnp.float32),
        grid=(N,),
        in_specs=[
            pl.BlockSpec((None, Cp, HWp), lambda n: (n, 0, 0)),   # x (flattened)
            pl.BlockSpec((Cp, K1), lambda n: (0, 0)),             # w1 (fused-K)
            pl.BlockSpec((Cp, 1), lambda n: (0, 0)),              # b1
            pl.BlockSpec((C2p, K1), lambda n: (0, 0)),            # w2 (fused-K)
            pl.BlockSpec((C2p, 1), lambda n: (0, 0)),             # b2
            pl.BlockSpec((C2p, Cp), lambda n: (0, 0)),            # 1x1 shortcut
            pl.BlockSpec((1, HWp), lambda n: (0, 0)),             # valid-col mask
        ],
        out_specs=pl.BlockSpec((None, C2p, HWp), lambda n: (n, 0, 0)),
        scratch_shapes=[pltpu.VMEM((Cp, L), jnp.bfloat16),        # shared y plane
                        pltpu.VMEM((Cp, HWp), jnp.float32),       # masked conv1 act
                        pltpu.VMEM((K1, chunk), jnp.bfloat16)],   # fused-K tap stack
        compiler_params=pltpu.CompilerParams(
            dimension_semantics=("parallel",),   # independent batch -> both TCs on v7x
            vmem_limit_bytes=vmem_limit),
    )(xf, w1, b1, w2, b2, ws, mask)

    # Strip channel padding + over-wide columns (wrapper-side layout plumbing).
    return out_wide.reshape(N, C2p, H, Wp)[:, :C2, :, :W]


def ref_forward(x, params, *, dim2=None, kernel_size=3, dilation=1,
                eps=1e-5, neg_slope=0.2):
    """Pure-JAX reference mirroring the PyTorch ResnetBlock forward."""
    pw = (kernel_size - 1) // 2 + (dilation - 1)

    def pad(z):
        return jnp.pad(z, ((0, 0), (0, 0), (pw, pw), (pw, pw)))

    def inorm(z):
        m = jnp.mean(z, axis=(2, 3), keepdims=True)
        v = jnp.var(z, axis=(2, 3), keepdims=True)   # biased, like InstanceNorm2d
        return (z - m) / jnp.sqrt(v + eps)

    def conv(z, w, b=None, dil=1):
        out = jax.lax.conv_general_dilated(
            z, w, window_strides=(1, 1), padding="VALID",
            rhs_dilation=(dil, dil),
            dimension_numbers=("NCHW", "OIHW", "NCHW"),
            precision=jax.lax.Precision.HIGHEST)
        if b is not None:
            out = out + b[None, :, None, None]
        return out

    h = conv(inorm(pad(x)), params["w1"], params["b1"], dil=dilation)
    h = jnp.where(h >= 0, h, neg_slope * h)
    y = conv(inorm(pad(h)), params["w2"], params["b2"], dil=dilation)
    sc = x if dim2 is None else conv(x, params["ws"])
    return sc + y


if __name__ == "__main__":
    # TODO(synk): spectral_norm is imported but unused in the reference module; nothing to translate.
    N, C, H, W = 2, 4, 16, 16
    k = 3
    key = jax.random.PRNGKey(0)
    kx, k1, kb1, k2, kb2, kw2b, kb2b, ksc = jax.random.split(key, 8)

    x = jax.random.normal(kx, (N, C, H, W), jnp.float32)

    # Case 1: identity shortcut (dim2=None), dilation=1.
    p1 = {
        "w1": 0.1 * jax.random.normal(k1, (C, C, k, k), jnp.float32),
        "b1": 0.1 * jax.random.normal(kb1, (C,), jnp.float32),
        "w2": 0.1 * jax.random.normal(k2, (C, C, k, k), jnp.float32),
        "b2": 0.1 * jax.random.normal(kb2, (C,), jnp.float32),
    }
    out1 = jax.block_until_ready(resnet_block(x, p1, dim=C))
    ref1 = ref_forward(x, p1)
    assert out1.shape == (N, C, H, W), out1.shape
    err1 = float(jnp.max(jnp.abs(out1 - ref1)))
    # bf16 matmul operands -> slightly looser tolerance than pure-f32.
    assert jnp.allclose(out1, ref1, rtol=3e-2, atol=3e-2), err1

    # Case 2: 1x1-conv shortcut (dim2 != dim), dilation=2.
    C2 = 8
    p2 = {
        "w1": p1["w1"], "b1": p1["b1"],
        "w2": 0.1 * jax.random.normal(kw2b, (C2, C, k, k), jnp.float32),
        "b2": 0.1 * jax.random.normal(kb2b, (C2,), jnp.float32),
        "ws": 0.1 * jax.random.normal(ksc, (C2, C, 1, 1), jnp.float32),
    }
    out2 = jax.block_until_ready(resnet_block(x, p2, dim=C, dim2=C2, dilation=2))
    ref2 = ref_forward(x, p2, dim2=C2, dilation=2)
    assert out2.shape == (N, C2, H, W), out2.shape
    err2 = float(jnp.max(jnp.abs(out2 - ref2)))
    assert jnp.allclose(out2, ref2, rtol=3e-2, atol=3e-2), err2

    print("KERNEL_OK")
</pallas_src>

<mosaic_0001>
module attributes {stable_mosaic.version = 11 : i64} {
  func.func @_resnet_block_kernel(%arg0: i32, %arg1: memref<1x16x288xf32, #tpu.memory_space<vmem>>, %arg2: memref<16x144xbf16, #tpu.memory_space<vmem>>, %arg3: memref<16x1xf32, #tpu.memory_space<vmem>>, %arg4: memref<16x144xbf16, #tpu.memory_space<vmem>>, %arg5: memref<16x1xf32, #tpu.memory_space<vmem>>, %arg6: memref<16x16xbf16, #tpu.memory_space<vmem>>, %arg7: memref<1x288xf32, #tpu.memory_space<vmem>>, %arg8: memref<1x16x288xf32, #tpu.memory_space<vmem>>, %arg9: memref<16x384xbf16, #tpu.memory_space<vmem>>, %arg10: memref<16x288xf32, #tpu.memory_space<vmem>>, %arg11: memref<144x288xbf16, #tpu.memory_space<vmem>>) attributes {dimension_semantics = [#tpu.dimension_semantics<parallel>], iteration_bounds = array<i64: 2>, scalar_prefetch = 0 : i64, scratch_operands = 3 : i64, tpu.core_type = #tpu.core_type<tc>, window_params = [{transform_indices = @transform_0, window_bounds = array<i64: 1, 16, 288>}, {pipeline_mode = #tpu.pipeline_mode<synchronous>, transform_indices = @transform_1, window_bounds = array<i64: 16, 144>}, {pipeline_mode = #tpu.pipeline_mode<synchronous>, transform_indices = @transform_2, window_bounds = array<i64: 16, 1>}, {pipeline_mode = #tpu.pipeline_mode<synchronous>, transform_indices = @transform_3, window_bounds = array<i64: 16, 144>}, {pipeline_mode = #tpu.pipeline_mode<synchronous>, transform_indices = @transform_4, window_bounds = array<i64: 16, 1>}, {pipeline_mode = #tpu.pipeline_mode<synchronous>, transform_indices = @transform_5, window_bounds = array<i64: 16, 16>}, {pipeline_mode = #tpu.pipeline_mode<synchronous>, transform_indices = @transform_6, window_bounds = array<i64: 1, 288>}, {transform_indices = @transform_7, window_bounds = array<i64: 1, 16, 288>}]} {
    %c0 = arith.constant 0 : index
    %c0_0 = arith.constant 0 : index
    %c0_1 = arith.constant 0 : index
    %0 = vector.load %arg1[%c0, %c0_0, %c0_1] : memref<1x16x288xf32, #tpu.memory_space<vmem>>, vector<1x16x288xf32>
    %1 = vector.shape_cast %0 : vector<1x16x288xf32> to vector<16x288xf32>
    %cst = arith.constant dense<0.000000e+00> : vector<16xf32>
    %2 = vector.multi_reduction <add>, %1, %cst [1] : vector<16x288xf32> to vector<16xf32>
    %3 = vector.shape_cast %2 : vector<16xf32> to vector<16x1xf32>
    %cst_2 = arith.constant 3.240000e+02 : f32
    %4 = vector.broadcast %cst_2 : f32 to vector<16x1xf32>
    %5 = arith.divf %3, %4 : vector<16x1xf32>
    %6 = arith.mulf %1, %1 : vector<16x288xf32>
    %cst_3 = arith.constant dense<0.000000e+00> : vector<16xf32>
    %7 = vector.multi_reduction <add>, %6, %cst_3 [1] : vector<16x288xf32> to vector<16xf32>
    %8 = vector.shape_cast %7 : vector<16xf32> to vector<16x1xf32>
    %cst_4 = arith.constant 3.240000e+02 : f32
    %9 = vector.broadcast %cst_4 : f32 to vector<16x1xf32>
    %10 = arith.divf %8, %9 : vector<16x1xf32>
    %11 = arith.mulf %5, %5 : vector<16x1xf32>
    %12 = arith.subf %10, %11 : vector<16x1xf32>
    %cst_5 = arith.constant 0.000000e+00 : f32
    %13 = vector.broadcast %cst_5 : f32 to vector<16x1xf32>
    %14 = arith.maximumf %12, %13 : vector<16x1xf32>
    %cst_6 = arith.constant 9.99999974E-6 : f32
    %15 = vector.broadcast %cst_6 : f32 to vector<16x1xf32>
    %16 = arith.addf %14, %15 : vector<16x1xf32>
    %17 = math.rsqrt %16 : vector<16x1xf32>
    %18 = vector.broadcast %5 : vector<16x1xf32> to vector<16x288xf32>
    %19 = arith.subf %1, %18 : vector<16x288xf32>
    %20 = vector.broadcast %17 : vector<16x1xf32> to vector<16x288xf32>
    %21 = arith.mulf %19, %20 : vector<16x288xf32>
    %cst_7 = arith.constant 0.000000e+00 : f32
    %22 = vector.broadcast %cst_7 : f32 to vector<16x1xf32>
    %23 = arith.subf %22, %5 : vector<16x1xf32>
    %24 = arith.mulf %23, %17 : vector<16x1xf32>
    %25 = arith.truncf %24 : vector<16x1xf32> to vector<16x1xbf16>
    %26 = vector.shape_cast %25 : vector<16x1xbf16> to vector<16x1xbf16>
    %27 = vector.broadcast %26 : vector<16x1xbf16> to vector<16x19xbf16>
    %c0_8 = arith.constant 0 : index
    %c0_9 = arith.constant 0 : index
    %28 = vector.load %arg9[%c0_8, %c0_9] : memref<16x384xbf16, #tpu.memory_space<vmem>>, vector<16x19xbf16>
    tpu.vector_store %arg9[%c0_8, %c0_9], %27 {strides = array<i32>} : memref<16x384xbf16, #tpu.memory_space<vmem>>, vector<16x19xbf16>,
    %29 = vector.shape_cast %25 : vector<16x1xbf16> to vector<16x1xbf16>
    %30 = vector.broadcast %29 : vector<16x1xbf16> to vector<16x77xbf16>
    %c0_10 = arith.constant 0 : index
    %c307 = arith.constant 307 : index
    %31 = vector.load %arg9[%c0_10, %c307] : memref<16x384xbf16, #tpu.memory_space<vmem>>, vector<16x77xbf16>
    tpu.vector_store %arg9[%c0_10, %c307], %30 {strides = array<i32>} : memref<16x384xbf16, #tpu.memory_space<vmem>>, vector<16x77xbf16>,
    %32 = arith.truncf %21 : vector<16x288xf32> to vector<16x288xbf16>
    %c0_11 = arith.constant 0 : index
    %c19 = arith.constant 19 : index
    %33 = vector.load %arg9[%c0_11, %c19] : memref<16x384xbf16, #tpu.memory_space<vmem>>, vector<16x288xbf16>
    tpu.vector_store %arg9[%c0_11, %c19], %32 {strides = array<i32>} : memref<16x384xbf16, #tpu.memory_space<vmem>>, vector<16x288xbf16>,
    %c0_12 = arith.constant 0 : index
    %c0_13 = arith.constant 0 : index
    %34 = vector.load %arg9[%c0_12, %c0_13] : memref<16x384xbf16, #tpu.memory_space<vmem>>, vector<16x288xbf16>
    %c0_14 = arith.constant 0 : index
    %c0_15 = arith.constant 0 : index
    %35 = vector.load %arg11[%c0_14, %c0_15] : memref<144x288xbf16, #tpu.memory_space<vmem>>, vector<16x288xbf16>
    tpu.vector_store %arg11[%c0_14, %c0_15], %34 {strides = array<i32>} : memref<144x288xbf16, #tpu.memory_space<vmem>>, vector<16x288xbf16>,
    %c0_16 = arith.constant 0 : index
    %c1 = arith.constant 1 : index
    %36 = vector.load %arg9[%c0_16, %c1] : memref<16x384xbf16, #tpu.memory_space<vmem>>, vector<16x288xbf16>
    %c16 = arith.constant 16 : index
    %c0_17 = arith.constant 0 : index
    %37 = vector.load %arg11[%c16, %c0_17] : memref<144x288xbf16, #tpu.memory_space<vmem>>, vector<16x288xbf16>
    tpu.vector_store %arg11[%c16, %c0_17], %36 {strides = array<i32>} : memref<144x288xbf16, #tpu.memory_space<vmem>>, vector<16x288xbf16>,
    %c0_18 = arith.constant 0 : index
    %c2 = arith.constant 2 : index
    %38 = vector.load %arg9[%c0_18, %c2] : memref<16x384xbf16, #tpu.memory_space<vmem>>, vector<16x288xbf16>
    %c32 = arith.constant 32 : index
    %c0_19 = arith.constant 0 : index
    %39 = vector.load %arg11[%c32, %c0_19] : memref<144x288xbf16, #tpu.memory_space<vmem>>, vector<16x288xbf16>
    tpu.vector_store %arg11[%c32, %c0_19], %38 {strides = array<i32>} : memref<144x288xbf16, #tpu.memory_space<vmem>>, vector<16x288xbf16>,
    %c0_20 = arith.constant 0 : index
    %c18 = arith.constant 18 : index
    %40 = vector.load %arg9[%c0_20, %c18] : memref<16x384xbf16, #tpu.memory_space<vmem>>, vector<16x288xbf16>
    %c48 = arith.constant 48 : index
    %c0_21 = arith.constant 0 : index
    %41 = vector.load %arg11[%c48, %c0_21] : memref<144x288xbf16, #tpu.memory_space<vmem>>, vector<16x288xbf16>
    tpu.vector_store %arg11[%c48, %c0_21], %40 {strides = array<i32>} : memref<144x288xbf16, #tpu.memory_space<vmem>>, vector<16x288xbf16>,
    %c0_22 = arith.constant 0 : index
    %c19_23 = arith.constant 19 : index
    %42 = vector.load %arg9[%c0_22, %c19_23] : memref<16x384xbf16, #tpu.memory_space<vmem>>, vector<16x288xbf16>
    %c64 = arith.constant 64 : index
    %c0_24 = arith.constant 0 : index
    %43 = vector.load %arg11[%c64, %c0_24] : memref<144x288xbf16, #tpu.memory_space<vmem>>, vector<16x288xbf16>
    tpu.vector_store %arg11[%c64, %c0_24], %42 {strides = array<i32>} : memref<144x288xbf16, #tpu.memory_space<vmem>>, vector<16x288xbf16>,
    %c0_25 = arith.constant 0 : index
    %c20 = arith.constant 20 : index
    %44 = vector.load %arg9[%c0_25, %c20] : memref<16x384xbf16, #tpu.memory_space<vmem>>, vector<16x288xbf16>
    %c80 = arith.constant 80 : index
    %c0_26 = arith.constant 0 : index
    %45 = vector.load %arg11[%c80, %c0_26] : memref<144x288xbf16, #tpu.memory_space<vmem>>, vector<16x288xbf16>
    tpu.vector_store %arg11[%c80, %c0_26], %44 {strides = array<i32>} : memref<144x288xbf16, #tpu.memory_space<vmem>>, vector<16x288xbf16>,
    %c0_27 = arith.constant 0 : index
    %c36 = arith.constant 36 : index
    %46 = vector.load %arg9[%c0_27, %c36] : memref<16x384xbf16, #tpu.memory_space<vmem>>, vector<16x288xbf16>
    %c96 = arith.constant 96 : index
    %c0_28 = arith.constant 0 : index
    %47 = vector.load %arg11[%c96, %c0_28] : memref<144x288xbf16, #tpu.memory_space<vmem>>, vector<16x288xbf16>
    tpu.vector_store %arg11[%c96, %c0_28], %46 {strides = array<i32>} : memref<144x288xbf16, #tpu.memory_space<vmem>>, vector<16x288xbf16>,
    %c0_29 = arith.constant 0 : index
    %c37 = arith.constant 37 : index
    %48 = vector.load %arg9[%c0_29, %c37] : memref<16x384xbf16, #tpu.memory_space<vmem>>, vector<16x288xbf16>
    %c112 = arith.constant 112 : index
    %c0_30 = arith.constant 0 : index
    %49 = vector.load %arg11[%c112, %c0_30] : memref<144x288xbf16, #tpu.memory_space<vmem>>, vector<16x288xbf16>
    tpu.vector_store %arg11[%c112, %c0_30], %48 {strides = array<i32>} : memref<144x288xbf16, #tpu.memory_space<vmem>>, vector<16x288xbf16>,
    %c0_31 = arith.constant 0 : index
    %c38 = arith.constant 38 : index
    %50 = vector.load %arg9[%c0_31, %c38] : memref<16x384xbf16, #tpu.memory_space<vmem>>, vector<16x288xbf16>
    %c128 = arith.constant 128 : index
    %c0_32 = arith.constant 0 : index
    %51 = vector.load %arg11[%c128, %c0_32] : memref<144x288xbf16, #tpu.memory_space<vmem>>, vector<16x288xbf16>
    tpu.vector_store %arg11[%c128, %c0_32], %50 {strides = array<i32>} : memref<144x288xbf16, #tpu.memory_space<vmem>>, vector<16x288xbf16>,
    %c0_33 = arith.constant 0 : index
    %c0_34 = arith.constant 0 : index
    %52 = vector.load %arg2[%c0_33, %c0_34] : memref<16x144xbf16, #tpu.memory_space<vmem>>, vector<16x144xbf16>
    %c0_35 = arith.constant 0 : index
    %c0_36 = arith.constant 0 : index
    %53 = vector.load %arg11[%c0_35, %c0_36] : memref<144x288xbf16, #tpu.memory_space<vmem>>, vector<144x288xbf16>
    %cst_37 = arith.constant dense<0.000000e+00> : vector<16x288xf32>
    %54 = tpu.matmul %52, %53, %cst_37 {dimension_numbers = #tpu.dot_dimension_numbers<[1], [0], [0], [1], [0, 0, 1, 1], [], []>} : vector<16x144xbf16>, vector<144x288xbf16>, vector<16x288xf32> -> vector<16x288xf32>
    %c0_38 = arith.constant 0 : index
    %c0_39 = arith.constant 0 : index
    %55 = vector.load %arg3[%c0_38, %c0_39] : memref<16x1xf32, #tpu.memory_space<vmem>>, vector<16x1xf32>
    %56 = vector.broadcast %55 : vector<16x1xf32> to vector<16x288xf32>
    %57 = arith.addf %54, %56 : vector<16x288xf32>
    %cst_40 = arith.constant 0.000000e+00 : f32
    %58 = vector.broadcast %cst_40 : f32 to vector<16x288xf32>
    %59 = arith.cmpf oge, %57, %58 : vector<16x288xf32>
    %cst_41 = arith.constant 2.000000e-01 : f32
    %60 = vector.broadcast %cst_41 : f32 to vector<16x288xf32>
    %61 = arith.mulf %60, %57 : vector<16x288xf32>
    %62 = arith.select %59, %57, %61 : vector<16x288xi1>, vector<16x288xf32>
    %c0_42 = arith.constant 0 : index
    %c0_43 = arith.constant 0 : index
    %63 = vector.load %arg7[%c0_42, %c0_43] : memref<1x288xf32, #tpu.memory_space<vmem>>, vector<1x288xf32>
    %64 = vector.broadcast %63 : vector<1x288xf32> to vector<16x288xf32>
    %65 = arith.mulf %62, %64 : vector<16x288xf32>
    %c0_44 = arith.constant 0 : index
    %c0_45 = arith.constant 0 : index
    %66 = vector.load %arg10[%c0_44, %c0_45] : memref<16x288xf32, #tpu.memory_space<vmem>>, vector<16x288xf32>
    tpu.vector_store %arg10[%c0_44, %c0_45], %65 {strides = array<i32>} : memref<16x288xf32, #tpu.memory_space<vmem>>, vector<16x288xf32>,
    %c0_46 = arith.constant 0 : index
    %c0_47 = arith.constant 0 : index
    %67 = vector.load %arg10[%c0_46, %c0_47] : memref<16x288xf32, #tpu.memory_space<vmem>>, vector<16x288xf32>
    %cst_48 = arith.constant dense<0.000000e+00> : vector<16xf32>
    %68 = vector.multi_reduction <add>, %67, %cst_48 [1] : vector<16x288xf32> to vector<16xf32>
    %69 = vector.shape_cast %68 : vector<16xf32> to vector<16x1xf32>
    %cst_49 = arith.constant 3.240000e+02 : f32
    %70 = vector.broadcast %cst_49 : f32 to vector<16x1xf32>
    %71 = arith.divf %69, %70 : vector<16x1xf32>
    %72 = arith.mulf %67, %67 : vector<16x288xf32>
    %cst_50 = arith.constant dense<0.000000e+00> : vector<16xf32>
    %73 = vector.multi_reduction <add>, %72, %cst_50 [1] : vector<16x288xf32> to vector<16xf32>
    %74 = vector.shape_cast %73 : vector<16xf32> to vector<16x1xf32>
    %cst_51 = arith.constant 3.240000e+02 : f32
    %75 = vector.broadcast %cst_51 : f32 to vector<16x1xf32>
    %76 = arith.divf %74, %75 : vector<16x1xf32>
    %77 = arith.mulf %71, %71 : vector<16x1xf32>
    %78 = arith.subf %76, %77 : vector<16x1xf32>
    %cst_52 = arith.constant 0.000000e+00 : f32
    %79 = vector.broadcast %cst_52 : f32 to vector<16x1xf32>
    %80 = arith.maximumf %78, %79 : vector<16x1xf32>
    %cst_53 = arith.constant 9.99999974E-6 : f32
    %81 = vector.broadcast %cst_53 : f32 to vector<16x1xf32>
    %82 = arith.addf %80, %81 : vector<16x1xf32>
    %83 = math.rsqrt %82 : vector<16x1xf32>
    %84 = vector.broadcast %71 : vector<16x1xf32> to vector<16x288xf32>
    %85 = arith.subf %67, %84 : vector<16x288xf32>
    %86 = vector.broadcast %83 : vector<16x1xf32> to vector<16x288xf32>
    %87 = arith.mulf %85, %86 : vector<16x288xf32>
    %cst_54 = arith.constant 0.000000e+00 : f32
    %88 = vector.broadcast %cst_54 : f32 to vector<16x1xf32>
    %89 = arith.subf %88, %71 : vector<16x1xf32>
    %90 = arith.mulf %89, %83 : vector<16x1xf32>
    %91 = arith.truncf %90 : vector<16x1xf32> to vector<16x1xbf16>
    %92 = vector.shape_cast %91 : vector<16x1xbf16> to vector<16x1xbf16>
    %93 = vector.broadcast %92 : vector<16x1xbf16> to vector<16x19xbf16>
    %c0_55 = arith.constant 0 : index
    %c0_56 = arith.constant 0 : index
    %94 = vector.load %arg9[%c0_55, %c0_56] : memref<16x384xbf16, #tpu.memory_space<vmem>>, vector<16x19xbf16>
    tpu.vector_store %arg9[%c0_55, %c0_56], %93 {strides = array<i32>} : memref<16x384xbf16, #tpu.memory_space<vmem>>, vector<16x19xbf16>,
    %95 = vector.shape_cast %91 : vector<16x1xbf16> to vector<16x1xbf16>
    %96 = vector.broadcast %95 : vector<16x1xbf16> to vector<16x77xbf16>
    %c0_57 = arith.constant 0 : index
    %c307_58 = arith.constant 307 : index
    %97 = vector.load %arg9[%c0_57, %c307_58] : memref<16x384xbf16, #tpu.memory_space<vmem>>, vector<16x77xbf16>
    tpu.vector_store %arg9[%c0_57, %c307_58], %96 {strides = array<i32>} : memref<16x384xbf16, #tpu.memory_space<vmem>>, vector<16x77xbf16>,
    %98 = arith.truncf %87 : vector<16x288xf32> to vector<16x288xbf16>
    %c0_59 = arith.constant 0 : index
    %c19_60 = arith.constant 19 : index
    %99 = vector.load %arg9[%c0_59, %c19_60] : memref<16x384xbf16, #tpu.memory_space<vmem>>, vector<16x288xbf16>
    tpu.vector_store %arg9[%c0_59, %c19_60], %98 {strides = array<i32>} : memref<16x384xbf16, #tpu.memory_space<vmem>>, vector<16x288xbf16>,
    %c0_61 = arith.constant 0 : index
    %c0_62 = arith.constant 0 : index
    %100 = vector.load %arg9[%c0_61, %c0_62] : memref<16x384xbf16, #tpu.memory_space<vmem>>, vector<16x288xbf16>
    %c0_63 = arith.constant 0 : index
    %c0_64 = arith.constant 0 : index
    %101 = vector.load %arg11[%c0_63, %c0_64] : memref<144x288xbf16, #tpu.memory_space<vmem>>, vector<16x288xbf16>
    tpu.vector_store %arg11[%c0_63, %c0_64], %100 {strides = array<i32>} : memref<144x288xbf16, #tpu.memory_space<vmem>>, vector<16x288xbf16>,
    %c0_65 = arith.constant 0 : index
    %c1_66 = arith.constant 1 : index
    %102 = vector.load %arg9[%c0_65, %c1_66] : memref<16x384xbf16, #tpu.memory_space<vmem>>, vector<16x288xbf16>
    %c16_67 = arith.constant 16 : index
    %c0_68 = arith.constant 0 : index
    %103 = vector.load %arg11[%c16_67, %c0_68] : memref<144x288xbf16, #tpu.memory_space<vmem>>, vector<16x288xbf16>
    tpu.vector_store %arg11[%c16_67, %c0_68], %102 {strides = array<i32>} : memref<144x288xbf16, #tpu.memory_space<vmem>>, vector<16x288xbf16>,
    %c0_69 = arith.constant 0 : index
    %c2_70 = arith.constant 2 : index
    %104 = vector.load %arg9[%c0_69, %c2_70] : memref<16x384xbf16, #tpu.memory_space<vmem>>, vector<16x288xbf16>
    %c32_71 = arith.constant 32 : index
    %c0_72 = arith.constant 0 : index
    %105 = vector.load %arg11[%c32_71, %c0_72] : memref<144x288xbf16, #tpu.memory_space<vmem>>, vector<16x288xbf16>
    tpu.vector_store %arg11[%c32_71, %c0_72], %104 {strides = array<i32>} : memref<144x288xbf16, #tpu.memory_space<vmem>>, vector<16x288xbf16>,
    %c0_73 = arith.constant 0 : index
    %c18_74 = arith.constant 18 : index
    %106 = vector.load %arg9[%c0_73, %c18_74] : memref<16x384xbf16, #tpu.memory_space<vmem>>, vector<16x288xbf16>
    %c48_75 = arith.constant 48 : index
    %c0_76 = arith.constant 0 : index
    %107 = vector.load %arg11[%c48_75, %c0_76] : memref<144x288xbf16, #tpu.memory_space<vmem>>, vector<16x288xbf16>
    tpu.vector_store %arg11[%c48_75, %c0_76], %106 {strides = array<i32>} : memref<144x288xbf16, #tpu.memory_space<vmem>>, vector<16x288xbf16>,
    %c0_77 = arith.constant 0 : index
    %c19_78 = arith.constant 19 : index
    %108 = vector.load %arg9[%c0_77, %c19_78] : memref<16x384xbf16, #tpu.memory_space<vmem>>, vector<16x288xbf16>
    %c64_79 = arith.constant 64 : index
    %c0_80 = arith.constant 0 : index
    %109 = vector.load %arg11[%c64_79, %c0_80] : memref<144x288xbf16, #tpu.memory_space<vmem>>, vector<16x288xbf16>
    tpu.vector_store %arg11[%c64_79, %c0_80], %108 {strides = array<i32>} : memref<144x288xbf16, #tpu.memory_space<vmem>>, vector<16x288xbf16>,
    %c0_81 = arith.constant 0 : index
    %c20_82 = arith.constant 20 : index
    %110 = vector.load %arg9[%c0_81, %c20_82] : memref<16x384xbf16, #tpu.memory_space<vmem>>, vector<16x288xbf16>
    %c80_83 = arith.constant 80 : index
    %c0_84 = arith.constant 0 : index
    %111 = vector.load %arg11[%c80_83, %c0_84] : memref<144x288xbf16, #tpu.memory_space<vmem>>, vector<16x288xbf16>
    tpu.vector_store %arg11[%c80_83, %c0_84], %110 {strides = array<i32>} : memref<144x288xbf16, #tpu.memory_space<vmem>>, vector<16x288xbf16>,
    %c0_85 = arith.constant 0 : index
    %c36_86 = arith.constant 36 : index
    %112 = vector.load %arg9[%c0_85, %c36_86] : memref<16x384xbf16, #tpu.memory_space<vmem>>, vector<16x288xbf16>
    %c96_87 = arith.constant 96 : index
    %c0_88 = arith.constant 0 : index
    %113 = vector.load %arg11[%c96_87, %c0_88] : memref<144x288xbf16, #tpu.memory_space<vmem>>, vector<16x288xbf16>
    tpu.vector_store %arg11[%c96_87, %c0_88], %112 {strides = array<i32>} : memref<144x288xbf16, #tpu.memory_space<vmem>>, vector<16x288xbf16>,
    %c0_89 = arith.constant 0 : index
    %c37_90 = arith.constant 37 : index
    %114 = vector.load %arg9[%c0_89, %c37_90] : memref<16x384xbf16, #tpu.memory_space<vmem>>, vector<16x288xbf16>
    %c112_91 = arith.constant 112 : index
    %c0_92 = arith.constant 0 : index
    %115 = vector.load %arg11[%c112_91, %c0_92] : memref<144x288xbf16, #tpu.memory_space<vmem>>, vector<16x288xbf16>
    tpu.vector_store %arg11[%c112_91, %c0_92], %114 {strides = array<i32>} : memref<144x288xbf16, #tpu.memory_space<vmem>>, vector<16x288xbf16>,
    %c0_93 = arith.constant 0 : index
    %c38_94 = arith.constant 38 : index
    %116 = vector.load %arg9[%c0_93, %c38_94] : memref<16x384xbf16, #tpu.memory_space<vmem>>, vector<16x288xbf16>
    %c128_95 = arith.constant 128 : index
    %c0_96 = arith.constant 0 : index
    %117 = vector.load %arg11[%c128_95, %c0_96] : memref<144x288xbf16, #tpu.memory_space<vmem>>, vector<16x288xbf16>
    tpu.vector_store %arg11[%c128_95, %c0_96], %116 {strides = array<i32>} : memref<144x288xbf16, #tpu.memory_space<vmem>>, vector<16x288xbf16>,
    %c0_97 = arith.constant 0 : index
    %c0_98 = arith.constant 0 : index
    %118 = vector.load %arg4[%c0_97, %c0_98] : memref<16x144xbf16, #tpu.memory_space<vmem>>, vector<16x144xbf16>
    %c0_99 = arith.constant 0 : index
    %c0_100 = arith.constant 0 : index
    %119 = vector.load %arg11[%c0_99, %c0_100] : memref<144x288xbf16, #tpu.memory_space<vmem>>, vector<144x288xbf16>
    %cst_101 = arith.constant dense<0.000000e+00> : vector<16x288xf32>
    %120 = tpu.matmul %118, %119, %cst_101 {dimension_numbers = #tpu.dot_dimension_numbers<[1], [0], [0], [1], [0, 0, 1, 1], [], []>} : vector<16x144xbf16>, vector<144x288xbf16>, vector<16x288xf32> -> vector<16x288xf32>
    %c0_102 = arith.constant 0 : index
    %c0_103 = arith.constant 0 : index
    %121 = vector.load %arg5[%c0_102, %c0_103] : memref<16x1xf32, #tpu.memory_space<vmem>>, vector<16x1xf32>
    %122 = vector.broadcast %121 : vector<16x1xf32> to vector<16x288xf32>
    %123 = arith.addf %120, %122 : vector<16x288xf32>
    %c0_104 = arith.constant 0 : index
    %c0_105 = arith.constant 0 : index
    %c0_106 = arith.constant 0 : index
    %124 = vector.load %arg1[%c0_104, %c0_105, %c0_106] : memref<1x16x288xf32, #tpu.memory_space<vmem>>, vector<1x16x288xf32>
    %125 = vector.shape_cast %124 : vector<1x16x288xf32> to vector<16x288xf32>
    %126 = arith.addf %123, %125 : vector<16x288xf32>
    %c0_107 = arith.constant 0 : index
    %c0_108 = arith.constant 0 : index
    %c0_109 = arith.constant 0 : index
    %127 = vector.load %arg8[%c0_107, %c0_108, %c0_109] : memref<1x16x288xf32, #tpu.memory_space<vmem>>, vector<1x16x288xf32>
    %128 = vector.shape_cast %127 : vector<1x16x288xf32> to vector<16x288xf32>
    %129 = vector.shape_cast %126 : vector<16x288xf32> to vector<1x16x288xf32>
    tpu.vector_store %arg8[%c0_107, %c0_108, %c0_109], %129 {strides = array<i32>} : memref<1x16x288xf32, #tpu.memory_space<vmem>>, vector<1x16x288xf32>,
    return
  }
  func.func @transform_0(%arg0: i32) -> (i32, i32, i32) {
    %c0_i32 = arith.constant 0 : i32
    %c0_i32_0 = arith.constant 0 : i32
    %c0_i32_1 = arith.constant 0 : i32
    return %arg0, %c0_i32, %c0_i32_0 : i32, i32, i32
  }
  func.func @transform_1(%arg0: i32) -> (i32, i32) {
    %c0_i32 = arith.constant 0 : i32
    %c0_i32_0 = arith.constant 0 : i32
    %c0_i32_1 = arith.constant 0 : i32
    return %c0_i32, %c0_i32_0 : i32, i32
  }
  func.func @transform_2(%arg0: i32) -> (i32, i32) {
    %c0_i32 = arith.constant 0 : i32
    %c0_i32_0 = arith.constant 0 : i32
    %c0_i32_1 = arith.constant 0 : i32
    return %c0_i32, %c0_i32_0 : i32, i32
  }
  func.func @transform_3(%arg0: i32) -> (i32, i32) {
    %c0_i32 = arith.constant 0 : i32
    %c0_i32_0 = arith.constant 0 : i32
    %c0_i32_1 = arith.constant 0 : i32
    return %c0_i32, %c0_i32_0 : i32, i32
  }
  func.func @transform_4(%arg0: i32) -> (i32, i32) {
    %c0_i32 = arith.constant 0 : i32
    %c0_i32_0 = arith.constant 0 : i32
    %c0_i32_1 = arith.constant 0 : i32
    return %c0_i32, %c0_i32_0 : i32, i32
  }
  func.func @transform_5(%arg0: i32) -> (i32, i32) {
    %c0_i32 = arith.constant 0 : i32
    %c0_i32_0 = arith.constant 0 : i32
    %c0_i32_1 = arith.constant 0 : i32
    return %c0_i32, %c0_i32_0 : i32, i32
  }
  func.func @transform_6(%arg0: i32) -> (i32, i32) {
    %c0_i32 = arith.constant 0 : i32
    %c0_i32_0 = arith.constant 0 : i32
    %c0_i32_1 = arith.constant 0 : i32
    return %c0_i32, %c0_i32_0 : i32, i32
  }
  func.func @transform_7(%arg0: i32) -> (i32, i32, i32) {
    %c0_i32 = arith.constant 0 : i32
    %c0_i32_0 = arith.constant 0 : i32
    %c0_i32_1 = arith.constant 0 : i32
    return %arg0, %c0_i32, %c0_i32_0 : i32, i32, i32
  }
}

</mosaic_0001>

<bundles_post_ra>
// kernel: tpu_custom_call.1
= control target key start
LH: loop header
LB: loop body
LE: loop exit
PB: predicated region body
PF: predicated region fallthrough
CT: control target
= control target key end

     0   :  { %12 = vsyncpa [#allocation6], 0  ;;  %s1872_s0 = inlined_call_operand.hbm [shape: f32[2,16,288], index: 0, kind: input, shape index: {}]   ;;  %s1873_s1 = inlined_call_operand.vmem [shape: bf16[16,144], index: 1, kind: input, shape index: {}]   ;;  %s1874_s2 = inlined_call_operand.vmem [shape: f32[16,1], index: 2, kind: input, shape index: {}]   ;;  %s1875_s3 = inlined_call_operand.vmem [shape: bf16[16,144], index: 3, kind: input, shape index: {}]   ;;  %s1876_s4 = inlined_call_operand.vmem [shape: f32[16,1], index: 4, kind: input, shape index: {}]   ;;  %s1877_s5 = inlined_call_operand.vmem [shape: bf16[16,16], index: 5, kind: input, shape index: {}]   ;;  %s1878_s6 = inlined_call_operand.vmem [shape: f32[1,288], index: 6, kind: input, shape index: {}]   ;;  %s1879_s7 = inlined_call_operand.hbm [shape: f32[2,16,288], index: 7, kind: output, shape index: {}]  }
   0x1   :  { %14 = vsyncpa [#allocation6 + $0x1], 0 }
   0x2   :  { %15 = vsyncpa [#allocation7], 0 }
   0x3   :  { %17 = vsyncpa [#allocation7 + $0x1], 0  ;;  %s1492_s24 = smov 0   ;;  %s1494_s25 = smov 0  }
   0x4   :  { %s1496_s26 = smov 0   ;;  %s1498_s27 = smov 0  }
   0x5 LB: > { %s1513_s5 = sadd.s32 4294967295, %s1434_s27   ;;  %s1242_s28 = sadd.s32 4294967294, %s1434_s27   ;;  %s1434_s27 = sphi %s1498_s27, %s1902_s27   ;;  %s1430_s26 = sphi %s1496_s26, %s1901_s26   ;;  %s1426_s25 = sphi %s1494_s25, %s1900_s25   ;;  %s1422_s24 = sphi %s1492_s24, %s1899_s24  }
   0x6   : > { %s1517_s29 = sadd.s32 1, %s1434_s27   ;;  %s30_s30 = sadd.s32 1, %s1430_s26 }
   0x7   : > { %s27_s8 = ssub.s32 %s1434_s27, %s1517_s29  ;;  %p37_p0 = scmp.ne.s32.totalorder %s1430_s26, %s1426_s25 }
   0x8   : > { %p28_p1 = scmp.eq.s32.totalorder %s27_s8, 0  ;;  %p38_p2 = scmp.eq.s32.totalorder %s1434_s27, 0 }
   0x9   : > { %p43_p3 = scmp.ne.s32.totalorder %s1426_s25, %s1422_s24  ;;  %p44_p4 = scmp.eq.s32.totalorder %s1513_s5, 0 }
   0xa   : > { %s1529_s9 = scalar_select %p28_p1, %s1430_s26, %s30_s30  }
   0xb   : > { %p39_p5 = por %p38_p2, %p37_p0  ;;  %p1531_p6 = por %p44_p4, %p43_p3 }
   0xc   : > { %p193_p7 = scmp.eq.s32.totalorder %s1513_s5, 1  ;;  %p199_p8 = scmp.eq.s32.totalorder %s1242_s28, 1 }
   0xd   : > { %p1274_p10 = scmp.lt.s32.totalorder %s1434_s27, 2  ;;  %s237_s13 = sand.u32 1, %s1430_s26  }
   0xe   : > { %p1538_p11 = por %p193_p7, %p37_p0  ;;  %p1542_p12 = por %p199_p8, %p43_p3 }
   0xf   : > { %s1259_s14 = smul.u32 768, %s1434_s27  ;;  %p1553_p13 = pnand %p1274_p10, %p39_p5 }
  0x10   : > { %s1886_s11 = scalar_select %p1538_p11, 1, 0 }
  0x11   : > { %s1887_s12 = scalar_select %p1542_p12, 1, 0 }
  0x12   : > { %s1258_s15 = smul.u32 48, %s237_s13  ;;  %s1551_s18 = scalar_lea.hbm %s1872_s0, %s1259_s14 }
  0x13   : > { %s1559_s22 = scalar_lea.sflag [#allocation6], %s237_s13  ;;  %s1338_s23 = scalar_lea.hbm %s1551_s18, 768 }
  0x14   : > { %s241_s20 = scalar_lea.vmem [#allocation5], %s1258_s15  ;;  %p1339_p0 = scmp.ne.s32.totalorder %s1551_s18, %s1338_s23 }
  0x15   : > { %s248_s21 = sshll.u32 %s241_s20, 4  ;;  %p1340_p1 = pneg %p1553_p13  ;;  %s1557_s21 = int_to_ptr.vmem [resolvable:$true] %s248_s21 }
  0x16   : > { %s1343_s8 = scalar_lea.hbm %s1872_s0, 1536  ;;  %p1344_p4 = scmp.lt.u32.totalorder %s1551_s18, %s1872_s0 }
  0x17   : > { %p1341_p2 = pnand %p1340_p1, %p1339_p0  ;;  %p1345_p5 = scmp.lt.u32.totalorder %s1343_s8, %s1338_s23 }
  0x18   : > { %p1347_p8 = scmp.lt.u32.totalorder %s1338_s23, %s1551_s18 }
  0x19   : > { %p1342_p3 = pneg %p1341_p2  ;;  %p1346_p7 = por %p1345_p5, %p1344_p4 }
  0x1b   : > { %p1348_p10 = por %p1347_p8, %p1346_p7 }
  0x1d   : > { %p1349_p9 = pnand %p1348_p10, %p1342_p3 }
  0x1f   : > { %1352 = shalt.err (!%p1349_p9)
}
  0x20   : > { %s1353_s13 = scalar_lea.vmem %s1557_s21, 768  ;;  %s1436_s15 = smov [#allocation5]  }
  0x21   : > { %p1354_p0 = scmp.ne.s32.totalorder %s1557_s21, %s1353_s13  ;;  %s1358_s17 = sshll.u32 %s1436_s15, 4  ;;  %s1359_s17 = int_to_ptr.vmem [resolvable:$false] %s1358_s17 }
  0x22   : > { %s1360_s20 = scalar_lea.vmem %s1359_s17, 1536  ;;  %p1361_p11 = scmp.lt.s32.totalorder %s1557_s21, %s1359_s17 }
  0x23   : > { %p1356_p2 = pnand %p1354_p0, %p1340_p1  ;;  %p1362_p4 = scmp.lt.s32.totalorder %s1360_s20, %s1353_s13 }
  0x25   : > { %p1357_p12 = pneg %p1356_p2  ;;  %p1363_p5 = por %p1362_p4, %p1361_p11 }
  0x27   : > { %p1364_p7 = pnand %p1363_p5, %p1357_p12 }
  0x29   : > { %1367 = shalt.err (!%p1364_p7)
}
  0x2a   : > { %s1437_s23 = smov 384   ;;  %s1438_s28 = smov 24  }
  0x2b   : > { %1269 = dma.hbm_to_vmem [thread:$0]  (!%p1553_p13), %s1551_s18, 768, %s1557_s21, %s1559_s22, %s1437_s23, %s1437_s23, %s1438_s28  }
  0x2c   : > { %p1246_p9 = scmp.ge.s32.totalorder %s1434_s27, 1  ;;  %p256_p1 = scmp.lt.s32.totalorder %s1434_s27, 3 }
  0x2e   : > { %p257_p3 = pnand %p1246_p9, %p256_p1 }
  0x2f   : > { %s1590_s30 = sand.u32 (!%p257_p3), 1, %s1426_s25  }
  0x30   : > { %260 = sbr.rel (%p257_p3) target bundleno = 1452 (0x5ac), region = 48  ;;  %s263_s14 = scalar_lea.sflag (!%p257_p3), [#allocation6], %s1590_s30 }
  0x31   : > { %s1881_s8 = smul.u32 (!%p257_p3), 48, %s1590_s30 }
  0x33   : > { %s1596_s16 = scalar_lea.vmem (!%p257_p3), [#allocation5], %s1881_s8 }
  0x37   : > { %1413 = dma.done.wait (%p1531_p6), %s263_s14, 768  }
  0x38   : > { %1415 = vsyncadd (%p1531_p6), %s263_s14, 4294966528  ;;  %vm305_vm0 = vcmask 261120   ;;  %v298_v0 = vld [vmem:[%s1596_s16] sm:$0xff]  ;;  %v299_v1 = vld [vmem:[%s1596_s16 + $0x8] sm:$0xff]  ;;  %vm363_vm1 = vcmask 154624   ;;  %vm365_vm2 = vcmask 1047960  }
  0x39   : > { %v1605_v2 = vld [vmem:[%s1596_s16 + $0x10] sm:$0xff]  ;;  %v304_v3 = vadd.f32 %v299_v1, %v298_v0  ;;  %v318_v5 = vmul.f32 %v298_v0, %v298_v0  ;;  %v319_v6 = vmul.f32 %v299_v1, %v299_v1  ;;  %v301_v7 = vld [vmem:[%s1596_s16 + $0x18] sm:$0xff]  ;;  %v302_v8 = vld [vmem:[%s1596_s16 + $0x20] sm:$0xff]  ;;  %s1439_s10 = smov 19   ;;  %v1440_v62 = vmov 0   ;;  %s1441_s18 = smov 126  }
  0x3a   : > { %v306_v4 = vsel %vm305_vm0, %v1605_v2, 0.0  ;;  %v303_v9 = vld [vmem:[%s1596_s16 + $0x28] sm:$0xff]  ;;  %v320_v10 = vmul.f32 %v1605_v2, %v1605_v2  ;;  %v310_v11 = vadd.f32 %v302_v8, %v301_v7  ;;  %v321_v13 = vmul.f32 %v301_v7, %v301_v7  ;;  %661 = vmatprep.subr.bf16.mxu1 %v1440_v62  ;;  %1323 = vset.pattern.permute.xlu0 %v1440_v62  ;;  %s1442_s19 = smov 127   ;;  %s1443_s21 = smov 109  }
  0x3b   : > { %v311_v12 = vsel %vm305_vm0, %v303_v9, 0.0  ;;  %v307_v14 = vadd.f32 %v306_v4, %v304_v3  ;;  %v324_v15 = vadd.f32 %v319_v6, %v318_v5  ;;  %v322_v16 = vmul.f32 %v302_v8, %v302_v8  ;;  %1322 = vset.pattern.permute.xlu1 %v1440_v62  ;;  %s1444_s22 = smov 110   ;;  %s1445_s13 = smov 92  }
  0x3c   : > { %v323_v17 = vmul.f32 %v303_v9, %v303_v9  ;;  %v325_v18 = vsel %vm305_vm0, %v320_v10, 0.0  ;;  %v312_v20 = vadd.f32 %v311_v12, %v310_v11  ;;  %vm385_vm3 = vcmask 1047704   ;;  %s1446_s15 = smov 108   ;;  %s1447_s17 = smov 91  }
  0x3d   : > { %308 = vadd.xlane.f32.xlu0 %v307_v14  ;;  %v326_v19 = vadd.f32 %v325_v18, %v324_v15  ;;  %v329_v21 = vadd.f32 %v322_v16, %v321_v13  ;;  %vm388_vm4 = vcmask 416768   ;;  %vm614_vm5 = vcmask 130048   ;;  %s1448_s28 = smov 90   ;;  %s1261_s20 = smul.u32 768, %s1513_s5 }
  0x3e   : > { %v330_v22 = vsel %vm305_vm0, %v323_v17, 0.0  ;;  %vm408_vm6 = vcmask 1039360   ;;  %vm429_vm7 = vcmask 1031168   ;;  %vm450_vm8 = vcmask 900096   ;;  %s1156_s5 = scalar_lea.sflag [#allocation7], %s1590_s30  ;;  %p1896_p11 = scmp.ne.s32.totalorder %s1886_s11, 0 }
  0x3f   : > { %327 = vadd.xlane.f32.xlu1 %v326_v19  ;;  %v331_v23 = vadd.f32 %v330_v22, %v329_v21  ;;  %vm471_vm9 = vcmask 891904   ;;  %vm1884_vm10 = vcmask 883712   ;;  %vm513_vm11 = vcmask 752640   ;;  %s1827_s8 = scalar_lea.hbm %s1879_s7, %s1261_s20 }
  0x40   : > { %vm1883_vm12 = vcmask 744448   ;;  %vm1882_vm13 = vcmask 736256  }
  0x41   : > { %313 = vadd.xlane.f32.xlu0 %v312_v20 }
  0x43   : > { %332 = vadd.xlane.f32.xlu1 %v331_v23 }
  0xca   : > { %v309_v24 = vpop.xlane.xlu0 %308 }
  0xcb   : > { %v316_v25 = vmul.f32 0.0030864198, %v309_v24 }
  0xcc   : > { %v328_v26 = vpop.xlane.xlu1 %327 }
  0xcd   : > { %v334_v27 = vmul.f32 0.0030864198, %v328_v26  ;;  %v336_v28 = vmul.f32 %v316_v25, %v316_v25  ;;  %v347_v41 = vsub.f32 %v299_v1, %v316_v25  ;;  %v346_v42 = vsub.f32 %v298_v0, %v316_v25 }
  0xce   : > { %v314_v29 = vpop.xlane.xlu0 %313  ;;  %v358_v43 = vsub.f32 0.0, %v316_v25  ;;  %v348_v55 = vsub.f32 %v1605_v2, %v316_v25 }
  0xcf   : > { %v338_v30 = vsub.f32 %v334_v27, %v336_v28  ;;  %v317_v31 = vmul.f32 0.0030864198, %v314_v29 }
  0xd0   : > { %v333_v32 = vpop.xlane.xlu1 %332 }
  0xd1   : > { %v340_v33 = vmax.f32 %v338_v30, 0.0  ;;  %v335_v34 = vmul.f32 0.0030864198, %v333_v32  ;;  %v337_v35 = vmul.f32 %v317_v31, %v317_v31  ;;  %v359_v44 = vsub.f32 0.0, %v317_v31 }
  0xd2   : > { %v350_v45 = vsub.f32 %v302_v8, %v317_v31  ;;  %v349_v46 = vsub.f32 %v301_v7, %v317_v31  ;;  %v351_v50 = vsub.f32 %v303_v9, %v317_v31  ;;  %v1326_v7 = vld [vmem:[%s1873_s1 + $0x4] ss:$8 sps:$4 sm:$0xff]  }
  0xd3   : > { %v342_v36 = vadd.f32 1e-05, %v340_v33  ;;  %v339_v37 = vsub.f32 %v335_v34, %v337_v35  ;;  %1250 = vmatprep.mubr.msk.bf16.mxu1 %vm614_vm5, %v1326_v7  ;;  %1249 = vmatprep.mubr.msk.bf16.mxu0 %vm614_vm5, %v1326_v7  ;;  %v594_v8 = vld [vmem:[%s1874_s2 + $0x8] sm:$0xff]  ;;  %v593_v9 = vld [vmem:[%s1874_s2] sm:$0xff] }
  0xd5   : > { %v341_v38 = vmax.f32 %v339_v37, 0.0  ;;  %1330 = vrsqrt.f32 %v342_v36 }
  0xd7   : > { %v343_v39 = vadd.f32 1e-05, %v341_v38 }
  0xd9   : > { %1332 = vrsqrt.f32 %v343_v39 }
  0xdf   : > { %v1331_v40 = vpop.eup %1330 }
  0xe0   : > { %v353_v48 = vmul.f32 %v1331_v40, %v347_v41  ;;  %v352_v49 = vmul.f32 %v1331_v40, %v346_v42  ;;  %v360_v53 = vmul.f32 %v1331_v40, %v358_v43  ;;  %v354_v60 = vmul.f32 %v1331_v40, %v348_v55 }
  0xe3   : > { %v1333_v47 = vpop.eup %1332 }
  0xe4   : > { %v356_v51 = vmul.f32 %v1333_v47, %v350_v45  ;;  %v355_v52 = vmul.f32 %v1333_v47, %v349_v46  ;;  %v361_v54 = vmul.f32 %v1333_v47, %v359_v44  ;;  %v357_v58 = vmul.f32 %v1333_v47, %v351_v50 }
  0xe6   : > { %v368_v56 = vpack.c.bf16 %v356_v51, %v353_v48  ;;  %v367_v57 = vpack.c.bf16 %v355_v52, %v352_v49  ;;  %v362_v59 = vpack.c.bf16 %v361_v54, %v360_v53  ;;  %v369_v61 = vpack.c.bf16 %v357_v58, %v354_v60 }
  0xe8   : > { %375 = vrot.lane.b32.xlu1 %v368_v56, %s1439_s10  ;;  %373 = vrot.lane.b32.xlu0 %v367_v57, %s1439_s10  ;;  %364 = vst.msk [vmem:[#allocation2] sm:$0xff] %vm363_vm1, %v362_v59  ;;  %v1324_v56 = vld [vmem:[%s1873_s1] ss:$8 sps:$4 sm:$0xff]  }
  0xe9   : > { %366 = vst.msk [vmem:[#allocation2 + $0x10] sm:$0xff] %vm365_vm2, %v362_v59  ;;  %v722_v59 = vlaneseq }
  0xeb   : > { %v723_v60 = vshrl.u32 %v722_v59, 7 }
  0xec   : > { %377 = vrot.lane.b32.xlu1 %v369_v61, %s1439_s10 }
 0x15a   : > { %v376_v63 = vpop.permute.xlu1 %375  ;;  %v374_v0 = vpop.permute.xlu0 %373 }
 0x15b   : > { %v380_v1 = vsel %vm363_vm1, %v374_v0, %v376_v63  ;;  %386 = vst.msk [vmem:[#allocation2] sm:$0xff] %vm385_vm3, %v374_v0  ;;  %v720_v0 = vld [vmem:[%s1878_s6] sm:$0x7] }
 0x15c   : > { %618 = vmatprep.subr.bf16.mxu0 %v380_v1 }
 0x15e   : > { %v378_v2 = vpop.permute.xlu1 %377 }
 0x15f   : > { %v381_v3 = vsel %vm363_vm1, %v376_v63, %v378_v2  ;;  %v724_v63 = vsub.s32 0, %v723_v60 }
 0x160   : > { %389 = vst.msk [vmem:[#allocation2 + $0x10] sm:$0xff] %vm388_vm4, %v381_v3 }
 0x162   : > { %v417_v4 = vld [vmem:[#allocation2] sm:$0xff] }
 0x163   : > { %423 = vrot.lane.b32.xlu0 %v417_v4, %s1441_s18  ;;  %402 = vrot.lane.b32.xlu1 %v417_v4, %s1442_s19 }
 0x164   : > { %619 = vmatpush1.bf16.msra.mxu0 %v417_v4 }
 0x167   : > { %465 = vrot.lane.b32.xlu0 %v417_v4, %s1443_s21  ;;  %444 = vrot.lane.b32.xlu1 %v417_v4, %s1444_s22  ;;  %v398_v5 = vld [vmem:[#allocation2 + $0x10] sm:$0xff] }
 0x168   : > { %395 = vst.msk [vmem:[#allocation4 + $0x10] sm:$0xff] %vm305_vm0, %v398_v5 }
 0x16b   : > { %507 = vrot.lane.b32.xlu0 %v417_v4, %s1445_s13  ;;  %486 = vrot.lane.b32.xlu1 %v417_v4, %s1446_s15 }
 0x16f   : > { %406 = vrot.lane.b32.xlu0 %v398_v5, %s1442_s19  ;;  %528 = vrot.lane.b32.xlu1 %v417_v4, %s1447_s17  ;;  %v568_v6 = vld [vmem:[#allocation4 + $0x10] sm:$0xff] }
 0x170   : > { %662 = vmatpush1.bf16.msra.mxu1 %v568_v6  ;;  %v725_v6 = vrot.slane %v720_v0, %v724_v63 }
 0x171   : > { %663 = vmatprep.subr.bf16.mxu1 %v1440_v62 }
 0x173   : > { %425 = vrot.lane.b32.xlu0 %v380_v1, %s1441_s18  ;;  %404 = vrot.lane.b32.xlu1 %v380_v1, %s1442_s19 }
 0x177   : > { %448 = vrot.lane.b32.xlu0 %v398_v5, %s1444_s22  ;;  %427 = vrot.lane.b32.xlu1 %v398_v5, %s1441_s18 }
 0x17b   : > { %467 = vrot.lane.b32.xlu0 %v380_v1, %s1443_s21  ;;  %446 = vrot.lane.b32.xlu1 %v380_v1, %s1444_s22 }
 0x17f   : > { %490 = vrot.lane.b32.xlu0 %v398_v5, %s1446_s15  ;;  %469 = vrot.lane.b32.xlu1 %v398_v5, %s1443_s21 }
 0x183   : > { %509 = vrot.lane.b32.xlu0 %v380_v1, %s1445_s13  ;;  %488 = vrot.lane.b32.xlu1 %v380_v1, %s1446_s15 }
 0x187   : > { %532 = vrot.lane.b32.xlu0 %v398_v5, %s1447_s17  ;;  %511 = vrot.lane.b32.xlu1 %v398_v5, %s1445_s13 }
 0x18b   : > { %551 = vrot.lane.b32.xlu0 %v380_v1, %s1448_s28  ;;  %530 = vrot.lane.b32.xlu1 %v380_v1, %s1447_s17  ;;  %v728_v1 = vsub.s32 1, %v723_v60 }
 0x18f   : > { %549 = vrot.lane.b32.xlu0 %v417_v4, %s1448_s28  ;;  %553 = vrot.lane.b32.xlu1 %v398_v5, %s1448_s28 }
 0x193   : > { %602 = vperm.xlu0 %1323, %v594_v8   ;;  %597 = vperm.xlu1 %1322, %v593_v9  }
 0x1d5   : > { %v424_v10 = vpop.permute.xlu0 %423  ;;  %v403_v11 = vpop.permute.xlu1 %402 }
 0x1d9   : > { %v466_v12 = vpop.permute.xlu0 %465  ;;  %v445_v13 = vpop.permute.xlu1 %444 }
 0x1dd   : > { %v508_v14 = vpop.permute.xlu0 %507  ;;  %v487_v15 = vpop.permute.xlu1 %486 }
 0x1e1   : > { %v407_v16 = vpop.permute.xlu0 %406  ;;  %v1667_v17 = vpop.permute.xlu1 %528 }
 0x1e2   : > { %416 = vst.msk [vmem:[#allocation4 + $0x28] sm:$0xff] %vm305_vm0, %v407_v16 }
 0x1e5   : > { %v426_v18 = vpop.permute.xlu0 %425  ;;  %v405_v19 = vpop.permute.xlu1 %404 }
 0x1e6   : > { %v409_v20 = vsel %vm408_vm6, %v403_v11, %v405_v19  ;;  %v410_v21 = vsel %vm408_vm6, %v405_v19, %v407_v16  ;;  %v430_v26 = vsel %vm429_vm7, %v424_v10, %v426_v18  ;;  %v729_v10 = vrot.slane %v720_v0, %v728_v1 }
 0x1e7   : > { %620 = vmatprep.subr.bf16.mxu0 %v410_v21 }
 0x1e8   : > { %621 = vmatpush1.bf16.msra.mxu0 %v409_v20 }
 0x1e9   : > { %v449_v22 = vpop.permute.xlu0 %448  ;;  %v428_v23 = vpop.permute.xlu1 %427  ;;  %v571_v24 = vld [vmem:[#allocation4 + $0x28] sm:$0xff] }
 0x1ea   : > { %458 = vst.msk [vmem:[#allocation4 + $0x58] sm:$0xff] %vm305_vm0, %v449_v22  ;;  %v431_v25 = vsel %vm429_vm7, %v426_v18, %v428_v23  ;;  %437 = vst.msk [vmem:[#allocation4 + $0x40] sm:$0xff] %vm305_vm0, %v428_v23  ;;  %664 = vmatpush1.bf16.msra.mxu1 %v571_v24 }
 0x1eb   : > { %665 = vmatprep.subr.bf16.mxu1 %v1440_v62  ;;  %622 = vmatprep.subr.bf16.mxu0 %v431_v25 }
 0x1ec   : > { %623 = vmatpush1.bf16.msra.mxu0 %v430_v26 }
 0x1ed   : > { %v468_v27 = vpop.permute.xlu0 %467  ;;  %v447_v28 = vpop.permute.xlu1 %446 }
 0x1ee   : > { %v451_v29 = vsel %vm450_vm8, %v445_v13, %v447_v28  ;;  %v452_v30 = vsel %vm450_vm8, %v447_v28, %v449_v22  ;;  %v472_v35 = vsel %vm471_vm9, %v466_v12, %v468_v27  ;;  %v732_v13 = vsub.s32 2, %v723_v60 }
 0x1ef   : > { %624 = vmatprep.subr.bf16.mxu0 %v452_v30 }
 0x1f0   : > { %625 = vmatpush1.bf16.msra.mxu0 %v451_v29 }
 0x1f1   : > { %v491_v31 = vpop.permute.xlu0 %490  ;;  %v470_v32 = vpop.permute.xlu1 %469  ;;  %v574_v33 = vld [vmem:[#allocation4 + $0x40] sm:$0xff]  ;;  %v577_v38 = vld [vmem:[#allocation4 + $0x58] sm:$0xff] }
 0x1f2   : > { %500 = vst.msk [vmem:[#allocation4 + $0x88] sm:$0xff] %vm305_vm0, %v491_v31  ;;  %v473_v34 = vsel %vm471_vm9, %v468_v27, %v470_v32  ;;  %479 = vst.msk [vmem:[#allocation4 + $0x70] sm:$0xff] %vm305_vm0, %v470_v32  ;;  %666 = vmatpush1.bf16.msra.mxu1 %v574_v33  ;;  %v733_v27 = vrot.slane %v720_v0, %v732_v13 }
 0x1f3   : > { %667 = vmatprep.subr.bf16.mxu1 %v1440_v62  ;;  %626 = vmatprep.subr.bf16.mxu0 %v473_v34 }
 0x1f4   : > { %627 = vmatpush1.bf16.msra.mxu0 %v472_v35 }
 0x1f5   : > { %v510_v36 = vpop.permute.xlu0 %509  ;;  %v489_v37 = vpop.permute.xlu1 %488 }
 0x1f6   : > { %v493_v39 = vsel %vm1884_vm10, %v487_v15, %v489_v37  ;;  %v494_v40 = vsel %vm1884_vm10, %v489_v37, %v491_v31  ;;  %668 = vmatpush1.bf16.msra.mxu1 %v577_v38  ;;  %v514_v45 = vsel %vm513_vm11, %v508_v14, %v510_v36 }
 0x1f7   : > { %669 = vmatprep.subr.bf16.mxu1 %v1440_v62  ;;  %628 = vmatprep.subr.bf16.mxu0 %v494_v40 }
 0x1f8   : > { %629 = vmatpush1.bf16.msra.mxu0 %v493_v39 }
 0x1f9   : > { %v533_v41 = vpop.permute.xlu0 %532  ;;  %v512_v42 = vpop.permute.xlu1 %511  ;;  %v580_v43 = vld [vmem:[#allocation4 + $0x70] sm:$0xff]  ;;  %v583_v48 = vld [vmem:[#allocation4 + $0x88] sm:$0xff] }
 0x1fa   : > { %542 = vst.msk [vmem:[#allocation4 + $0xb8] sm:$0xff] %vm305_vm0, %v533_v41  ;;  %v515_v44 = vsel %vm513_vm11, %v510_v36, %v512_v42  ;;  %521 = vst.msk [vmem:[#allocation4 + $0xa0] sm:$0xff] %vm305_vm0, %v512_v42  ;;  %670 = vmatpush1.bf16.msra.mxu1 %v580_v43 }
 0x1fb   : > { %671 = vmatprep.subr.bf16.mxu1 %v1440_v62  ;;  %630 = vmatprep.subr.bf16.mxu0 %v515_v44 }
 0x1fc   : > { %631 = vmatpush1.bf16.msra.mxu0 %v514_v45 }
 0x1fd   : > { %v552_v46 = vpop.permute.xlu0 %551  ;;  %v531_v47 = vpop.permute.xlu1 %530 }
 0x1fe   : > { %v535_v49 = vsel %vm1883_vm12, %v1667_v17, %v531_v47  ;;  %v536_v50 = vsel %vm1883_vm12, %v531_v47, %v533_v41  ;;  %672 = vmatpush1.bf16.msra.mxu1 %v583_v48 }
 0x1ff   : > { %673 = vmatprep.subr.bf16.mxu1 %v1440_v62  ;;  %632 = vmatprep.subr.bf16.mxu0 %v536_v50 }
 0x200   : > { %633 = vmatpush1.bf16.msra.mxu0 %v535_v49 }
 0x201   : > { %v550_v51 = vpop.permute.xlu0 %549  ;;  %v554_v52 = vpop.permute.xlu1 %553  ;;  %v586_v53 = vld [vmem:[#allocation4 + $0xa0] sm:$0xff]  ;;  %v589_v57 = vld [vmem:[#allocation4 + $0xb8] sm:$0xff] }
 0x202   : > { %v556_v54 = vsel %vm1882_vm13, %v550_v51, %v552_v46  ;;  %v557_v55 = vsel %vm1882_vm13, %v552_v46, %v554_v52  ;;  %563 = vst.msk [vmem:[#allocation4 + $0xd0] sm:$0xff] %vm305_vm0, %v554_v52  ;;  %674 = vmatpush1.bf16.msra.mxu1 %v586_v53 }
 0x203   : > { %675 = vmatprep.subr.bf16.mxu1 %v1440_v62  ;;  %634 = vmatprep.subr.bf16.mxu0 %v557_v55 }
 0x204   : > { %635 = vmatpush1.bf16.msra.mxu0 %v556_v54 }
 0x206   : > { %676 = vmatpush1.bf16.msra.mxu1 %v589_v57 }
 0x207   : > { %677 = vmatprep.subr.bf16.mxu1 %v1440_v62  ;;  %651 = vmatmul.mubr.bf16.vlgmr.msra.gmra.mrb[0].mxu0 %v1324_v56 }
 0x209   : > { %v592_v58 = vld [vmem:[#allocation4 + $0xd0] sm:$0xff] }
 0x20a   : > { %678 = vmatpush1.bf16.msra.mxu1 %v592_v58 }
 0x20b   : > { %1096 = vmatprep.subr.bf16.mxu1 %v1440_v62 }
 0x20d   : > { %694 = vmatmul.mubr.bf16.vlgmr.msra.gmra.mrb[0].mxu1 %v1324_v56 }
 0x212   : > { %v598_v61 = vpop.permute.xlu1 %597  ;;  %v603_v2 = vpop.permute.xlu0 %602 }
 0x2da   : > { %v652_v3 = vpop.f32.mrb[0].mxu0 }
 0x2db   : > { %v653_v4 = vadd.f32 %v652_v3, %v598_v61  ;;  %v654_v5 = vpop.f32.mrb[1].mxu0 }
 0x2dc   : > { %v655_v7 = vadd.f32 %v654_v5, %v598_v61  ;;  %v656_v8 = vpop.f32.mrb[2].mxu0 }
 0x2dd   : > { %vm702_vm14 = vcmp.ge.f32.partialorder %v653_v4, 0.0  ;;  %v708_v9 = vmul.f32 0.2, %v653_v4  ;;  %v657_v11 = vadd.f32 %v656_v8, %v603_v2  ;;  %v658_v12 = vpop.f32.mrb[3].mxu0 }
 0x2de   : > { %vm703_vm15 = vcmp.ge.f32.partialorder %v655_v7, 0.0  ;;  %v709_v14 = vmul.f32 0.2, %v655_v7  ;;  %v659_v15 = vadd.f32 %v658_v12, %v603_v2 }
 0x2df   : > { %v714_v16 = vsel %vm702_vm14, %v653_v4, %v708_v9  ;;  %vm705_vm13 = vcmp.ge.f32.partialorder %v657_v11, 0.0  ;;  %v711_v17 = vmul.f32 0.2, %v657_v11 }
 0x2e0   : > { %v695_v18 = vpop.f32.mrb[0].mxu1  ;;  %v1708_v19 = vmul.f32 %v725_v6, %v714_v16  ;;  %v715_v20 = vsel %vm703_vm15, %v655_v7, %v709_v14  ;;  %vm706_vm12 = vcmp.ge.f32.partialorder %v659_v15, 0.0  ;;  %v712_v21 = vmul.f32 0.2, %v659_v15 }
 0x2e1   : > { %v697_v22 = vpop.f32.mrb[1].mxu1  ;;  %v696_v23 = vadd.f32 %v695_v18, %v598_v61  ;;  %v1710_v24 = vmul.f32 %v729_v10, %v715_v20  ;;  %v717_v25 = vsel %vm705_vm13, %v657_v11, %v711_v17 }
 0x2e2   : > { %v698_v26 = vpop.f32.mrb[2].mxu1  ;;  %v1712_v28 = vmul.f32 %v725_v6, %v717_v25  ;;  %v718_v29 = vsel %vm706_vm12, %v659_v15, %v712_v21  ;;  %v767_v48 = vmul.f32 %v1708_v19, %v1708_v19 }
 0x2e3   : > { %v699_v30 = vadd.f32 %v698_v26, %v603_v2  ;;  %vm704_vm14 = vcmp.ge.f32.partialorder %v696_v23, 0.0  ;;  %v710_v31 = vmul.f32 0.2, %v696_v23  ;;  %v700_v32 = vpop.f32.mrb[3].mxu1  ;;  %v741_v33 = vmul.f32 %v729_v10, %v718_v29 }
 0x2e4   : > { %v755_v40 = vadd.f32 %v1710_v24, %v1708_v19  ;;  %v770_v41 = vmul.f32 %v1712_v28, %v1712_v28  ;;  %v768_v49 = vmul.f32 %v1710_v24, %v1710_v24 }
 0x2e5   : > { %vm707_vm10 = vcmp.ge.f32.partialorder %v699_v30, 0.0  ;;  %v713_v34 = vmul.f32 0.2, %v699_v30  ;;  %v716_v35 = vsel %vm704_vm14, %v696_v23, %v710_v31  ;;  %v771_v42 = vmul.f32 %v741_v33, %v741_v33 }
 0x2e6   : > { %v739_v36 = vmul.f32 %v733_v27, %v716_v35  ;;  %v760_v47 = vadd.f32 %v741_v33, %v1712_v28  ;;  %v773_v57 = vadd.f32 %v768_v49, %v767_v48 }
 0x2e7   : > { %v719_v37 = vsel %vm707_vm10, %v699_v30, %v713_v34  ;;  %v778_v53 = vadd.f32 %v771_v42, %v770_v41  ;;  %v1327_v42 = vld [vmem:[%s1875_s3 + $0x4] ss:$8 sps:$4 sm:$0xff]  }
 0x2e8   : > { %v742_v38 = vmul.f32 %v733_v27, %v719_v37  ;;  %745 = vst.msk [vmem:[#allocation3 + $0x10] sm:$0xff] %vm305_vm0, %v739_v36  ;;  %1254 = vmatprep.mubr.msk.bf16.mxu1 %vm614_vm5, %v1327_v42  ;;  %1253 = vmatprep.mubr.msk.bf16.mxu0 %vm614_vm5, %v1327_v42  ;;  %vm1893_vm5 = vcmask 736256  }
 0x2ea   : > { %748 = vst.msk [vmem:[#allocation3 + $0x28] sm:$0xff] %vm305_vm0, %v742_v38 }
 0x2ef   : > { %v751_v39 = vld [vmem:[#allocation3 + $0x10] sm:$0xff] }
 0x2f0   : > { %v756_v43 = vsel %vm305_vm0, %v751_v39, 0.0  ;;  %v769_v44 = vmul.f32 %v751_v39, %v751_v39 }
 0x2f1   : > { %v757_v45 = vadd.f32 %v756_v43, %v755_v40  ;;  %v754_v46 = vld [vmem:[#allocation3 + $0x28] sm:$0xff]  ;;  %v1030_v43 = vld [vmem:[%s1876_s4 + $0x8] sm:$0xff] }
 0x2f2   : > { %v761_v50 = vsel %vm305_vm0, %v754_v46, 0.0  ;;  %v772_v51 = vmul.f32 %v754_v46, %v754_v46  ;;  %v774_v55 = vsel %vm305_vm0, %v769_v44, 0.0  ;;  %v1029_v44 = vld [vmem:[%s1876_s4] sm:$0xff] }
 0x2f3   : > { %758 = vadd.xlane.f32.xlu1 %v757_v45  ;;  %v762_v52 = vadd.f32 %v761_v50, %v760_v47  ;;  %v775_v58 = vadd.f32 %v774_v55, %v773_v57 }
 0x2f4   : > { %v779_v54 = vsel %vm305_vm0, %v772_v51, 0.0 }
 0x2f5   : > { %763 = vadd.xlane.f32.xlu0 %v762_v52  ;;  %v780_v56 = vadd.f32 %v779_v54, %v778_v53 }
 0x2f7   : > { %781 = vadd.xlane.f32.xlu1 %v780_v56 }
 0x2f9   : > { %776 = vadd.xlane.f32.xlu0 %v775_v58 }
 0x380   : > { %v759_v59 = vpop.xlane.xlu1 %758 }
 0x381   : > { %v765_v61 = vmul.f32 0.0030864198, %v759_v59 }
 0x382   : > { %v764_v60 = vpop.xlane.xlu0 %763 }
 0x383   : > { %v766_v63 = vmul.f32 0.0030864198, %v764_v60  ;;  %v785_v6 = vmul.f32 %v765_v61, %v765_v61  ;;  %v807_v15 = vsub.f32 0.0, %v765_v61  ;;  %v796_v16 = vsub.f32 %v1710_v24, %v765_v61 }
 0x384   : > { %v782_v0 = vpop.xlane.xlu1 %781  ;;  %v795_v17 = vsub.f32 %v1708_v19, %v765_v61  ;;  %v797_v23 = vsub.f32 %v751_v39, %v765_v61 }
 0x385   : > { %v786_v1 = vmul.f32 %v766_v63, %v766_v63  ;;  %v784_v2 = vmul.f32 0.0030864198, %v782_v0  ;;  %v808_v13 = vsub.f32 0.0, %v766_v63  ;;  %v799_v14 = vsub.f32 %v741_v33, %v766_v63 }
 0x386   : > { %v777_v3 = vpop.xlane.xlu0 %776  ;;  %v798_v18 = vsub.f32 %v1712_v28, %v766_v63  ;;  %v800_v30 = vsub.f32 %v754_v46, %v766_v63 }
 0x387   : > { %v788_v4 = vsub.f32 %v784_v2, %v786_v1  ;;  %v783_v5 = vmul.f32 0.0030864198, %v777_v3 }
 0x389   : > { %v790_v7 = vmax.f32 %v788_v4, 0.0  ;;  %v787_v8 = vsub.f32 %v783_v5, %v785_v6 }
 0x38b   : > { %v792_v9 = vadd.f32 1e-05, %v790_v7  ;;  %v789_v10 = vmax.f32 %v787_v8, 0.0 }
 0x38d   : > { %1334 = vrsqrt.f32 %v792_v9  ;;  %v791_v11 = vadd.f32 1e-05, %v789_v10 }
 0x38f   : > { %1336 = vrsqrt.f32 %v791_v11 }
 0x397   : > { %v1335_v12 = vpop.eup %1334 }
 0x398   : > { %v810_v21 = vmul.f32 %v1335_v12, %v808_v13  ;;  %v805_v22 = vmul.f32 %v1335_v12, %v799_v14  ;;  %v804_v29 = vmul.f32 %v1335_v12, %v798_v18  ;;  %v806_v19 = vmul.f32 %v1335_v12, %v800_v30 }
 0x399   : > { %v1337_v20 = vpop.eup %1336 }
 0x39a   : > { %v809_v25 = vmul.f32 %v1337_v20, %v807_v15  ;;  %v802_v26 = vmul.f32 %v1337_v20, %v796_v16  ;;  %v801_v27 = vmul.f32 %v1337_v20, %v795_v17  ;;  %v803_v33 = vmul.f32 %v1337_v20, %v797_v23 }
 0x39c   : > { %v811_v31 = vpack.c.bf16 %v810_v21, %v809_v25  ;;  %v815_v32 = vpack.c.bf16 %v805_v22, %v802_v26  ;;  %v814_v34 = vpack.c.bf16 %v804_v29, %v801_v27  ;;  %v816_v24 = vpack.c.bf16 %v806_v19, %v803_v33 }
 0x39e   : > { %812 = vst.msk [vmem:[#allocation2] sm:$0xff] %vm363_vm1, %v811_v31  ;;  %822 = vrot.lane.b32.xlu1 %v815_v32, %s1439_s10  ;;  %820 = vrot.lane.b32.xlu0 %v814_v34, %s1439_s10 }
 0x39f   : > { %813 = vst.msk [vmem:[#allocation2 + $0x10] sm:$0xff] %vm365_vm2, %v811_v31  ;;  %v1329_v31 = vld [vmem:[%s1875_s3] ss:$8 sps:$4 sm:$0xff]  }
 0x3a2   : > { %824 = vrot.lane.b32.xlu1 %v816_v24, %s1439_s10  ;;  %v1137_v24 = vld [vmem:[%s1596_s16] sm:$0xff] }
 0x410   : > { %v823_v28 = vpop.permute.xlu1 %822  ;;  %v821_v35 = vpop.permute.xlu0 %820 }
 0x411   : > { %v826_v36 = vsel %vm363_vm1, %v821_v35, %v823_v28  ;;  %831 = vst.msk [vmem:[#allocation2] sm:$0xff] %vm385_vm3, %v821_v35  ;;  %vm1891_vm3 = vcmask 744448  }
 0x412   : > { %1053 = vmatprep.subr.bf16.mxu0 %v826_v36 }
 0x414   : > { %v825_v37 = vpop.permute.xlu1 %824 }
 0x415   : > { %v827_v38 = vsel %vm363_vm1, %v823_v28, %v825_v37  ;;  %vm1889_vm1 = vcmask 883712  }
 0x416   : > { %833 = vst.msk [vmem:[#allocation2 + $0x10] sm:$0xff] %vm388_vm4, %v827_v38  ;;  %vm1890_vm2 = vmmov %vm1889_vm1 }
 0x417   : > { %vm1892_vm4 = vmmov %vm1891_vm3 }
 0x418   : > { %v834_v39 = vld [vmem:[#allocation2] sm:$0xff] }
 0x419   : > { %866 = vrot.lane.b32.xlu0 %v834_v39, %s1441_s18  ;;  %846 = vrot.lane.b32.xlu1 %v834_v39, %s1442_s19 }
 0x41a   : > { %1054 = vmatpush1.bf16.msra.mxu0 %v834_v39 }
 0x41d   : > { %v836_v40 = vld [vmem:[#allocation2 + $0x10] sm:$0xff]  ;;  %906 = vrot.lane.b32.xlu0 %v834_v39, %s1443_s21  ;;  %886 = vrot.lane.b32.xlu1 %v834_v39, %s1444_s22 }
 0x41e   : > { %839 = vst.msk [vmem:[#allocation4 + $0x10] sm:$0xff] %vm305_vm0, %v836_v40 }
 0x421   : > { %946 = vrot.lane.b32.xlu0 %v834_v39, %s1445_s13  ;;  %926 = vrot.lane.b32.xlu1 %v834_v39, %s1446_s15 }
 0x425   : > { %850 = vrot.lane.b32.xlu0 %v836_v40, %s1442_s19  ;;  %966 = vrot.lane.b32.xlu1 %v834_v39, %s1447_s17  ;;  %v1004_v41 = vld [vmem:[#allocation4 + $0x10] sm:$0xff] }
 0x426   : > { %1097 = vmatpush1.bf16.msra.mxu1 %v1004_v41 }
 0x427   : > { %1098 = vmatprep.subr.bf16.mxu1 %v1440_v62 }
 0x429   : > { %868 = vrot.lane.b32.xlu0 %v826_v36, %s1441_s18  ;;  %848 = vrot.lane.b32.xlu1 %v826_v36, %s1442_s19 }
 0x42d   : > { %890 = vrot.lane.b32.xlu0 %v836_v40, %s1444_s22  ;;  %870 = vrot.lane.b32.xlu1 %v836_v40, %s1441_s18  ;;  %s1449_s18 = smov [#allocation8]  }
 0x42e   : > { %s1372_s19 = sshll.u32 %s1449_s18, 4  ;;  %s1373_s19 = int_to_ptr.vmem [resolvable:$false] %s1372_s19 }
 0x431   : > { %908 = vrot.lane.b32.xlu0 %v826_v36, %s1443_s21  ;;  %888 = vrot.lane.b32.xlu1 %v826_v36, %s1444_s22 }
 0x435   : > { %930 = vrot.lane.b32.xlu0 %v836_v40, %s1446_s15  ;;  %910 = vrot.lane.b32.xlu1 %v836_v40, %s1443_s21  ;;  %s1374_s21 = scalar_lea.vmem %s1373_s19, 1536 }
 0x439   : > { %948 = vrot.lane.b32.xlu0 %v826_v36, %s1445_s13  ;;  %928 = vrot.lane.b32.xlu1 %v826_v36, %s1446_s15 }
 0x43d   : > { %970 = vrot.lane.b32.xlu0 %v836_v40, %s1447_s17  ;;  %950 = vrot.lane.b32.xlu1 %v836_v40, %s1445_s13 }
 0x441   : > { %988 = vrot.lane.b32.xlu0 %v826_v36, %s1448_s28  ;;  %968 = vrot.lane.b32.xlu1 %v826_v36, %s1447_s17  ;;  %v1138_v36 = vld [vmem:[%s1596_s16 + $0x8] sm:$0xff]  ;;  %s1895_s17 = smul.u32 48, %s1590_s30 }
 0x445   : > { %986 = vrot.lane.b32.xlu0 %v834_v39, %s1448_s28  ;;  %990 = vrot.lane.b32.xlu1 %v836_v40, %s1448_s28  ;;  %v1140_v40 = vld [vmem:[%s1596_s16 + $0x18] sm:$0xff]  ;;  %s296_s28 = scalar_lea.vmem [#allocation8], %s1895_s17 }
 0x446   : > { %s1169_s14 = sshll.u32 %s296_s28, 4  ;;  %s1821_s14 = int_to_ptr.vmem [resolvable:$true] %s1169_s14 }
 0x447   : > { %p1375_p8 = scmp.lt.s32.totalorder %s1821_s14, %s1373_s19 }
 0x449   : > { %1038 = vperm.xlu0 %1323, %v1030_v43   ;;  %1033 = vperm.xlu1 %1322, %v1029_v44   ;;  %v1141_v43 = vld [vmem:[%s1596_s16 + $0x20] sm:$0xff] }
 0x48b   : > { %v867_v45 = vpop.permute.xlu0 %866  ;;  %v847_v46 = vpop.permute.xlu1 %846 }
 0x48f   : > { %v907_v47 = vpop.permute.xlu0 %906  ;;  %v887_v48 = vpop.permute.xlu1 %886 }
 0x493   : > { %v947_v49 = vpop.permute.xlu0 %946  ;;  %v927_v50 = vpop.permute.xlu1 %926 }
 0x497   : > { %v851_v51 = vpop.permute.xlu0 %850  ;;  %v967_v52 = vpop.permute.xlu1 %966 }
 0x498   : > { %859 = vst.msk [vmem:[#allocation4 + $0x28] sm:$0xff] %vm305_vm0, %v851_v51 }
 0x49b   : > { %v869_v53 = vpop.permute.xlu0 %868  ;;  %v849_v54 = vpop.permute.xlu1 %848 }
 0x49c   : > { %v872_v55 = vsel %vm429_vm7, %v867_v45, %v869_v53  ;;  %v852_v56 = vsel %vm408_vm6, %v847_v46, %v849_v54  ;;  %v853_v57 = vsel %vm408_vm6, %v849_v54, %v851_v51  ;;  %vm1894_vm6 = vmmov %vm1893_vm5 }
 0x49d   : > { %1055 = vmatprep.subr.bf16.mxu0 %v853_v57 }
 0x49e   : > { %1056 = vmatpush1.bf16.msra.mxu0 %v852_v56 }
 0x49f   : > { %v891_v58 = vpop.permute.xlu0 %890  ;;  %v871_v59 = vpop.permute.xlu1 %870  ;;  %v1007_v60 = vld [vmem:[#allocation4 + $0x28] sm:$0xff] }
 0x4a0   : > { %899 = vst.msk [vmem:[#allocation4 + $0x58] sm:$0xff] %vm305_vm0, %v891_v58  ;;  %v873_v61 = vsel %vm429_vm7, %v869_v53, %v871_v59  ;;  %879 = vst.msk [vmem:[#allocation4 + $0x40] sm:$0xff] %vm305_vm0, %v871_v59  ;;  %1099 = vmatpush1.bf16.msra.mxu1 %v1007_v60  ;;  %v1142_v53 = vld [vmem:[%s1596_s16 + $0x28] sm:$0xff] }
 0x4a1   : > { %1100 = vmatprep.subr.bf16.mxu1 %v1440_v62  ;;  %1057 = vmatprep.subr.bf16.mxu0 %v873_v61 }
 0x4a2   : > { %1058 = vmatpush1.bf16.msra.mxu0 %v872_v55 }
 0x4a3   : > { %v909_v63 = vpop.permute.xlu0 %908  ;;  %v889_v0 = vpop.permute.xlu1 %888 }
 0x4a4   : > { %v912_v1 = vsel %vm471_vm9, %v907_v47, %v909_v63  ;;  %v892_v2 = vsel %vm450_vm8, %v887_v48, %v889_v0  ;;  %v893_v3 = vsel %vm450_vm8, %v889_v0, %v891_v58  ;;  %v1139_v48 = vld [vmem:[%s1596_s16 + $0x10] sm:$0xff]  ;;  %s1368_s16 = scalar_lea.vmem %s1821_s14, 768 }
 0x4a5   : > { %1059 = vmatprep.subr.bf16.mxu0 %v893_v3  ;;  %p1369_p6 = scmp.ne.s32.totalorder %s1821_s14, %s1368_s16  ;;  %p1376_p10 = scmp.lt.s32.totalorder %s1374_s21, %s1368_s16 }
 0x4a6   : > { %1060 = vmatpush1.bf16.msra.mxu0 %v892_v2 }
 0x4a7   : > { %v931_v4 = vpop.permute.xlu0 %930  ;;  %v911_v5 = vpop.permute.xlu1 %910  ;;  %v1010_v6 = vld [vmem:[#allocation4 + $0x40] sm:$0xff]  ;;  %v1013_v10 = vld [vmem:[#allocation4 + $0x58] sm:$0xff]  ;;  %p1370_p12 = pnand %p1369_p6, %p1896_p11  ;;  %p1377_p0 = por %p1376_p10, %p1375_p8 }
 0x4a8   : > { %939 = vst.msk [vmem:[#allocation4 + $0x88] sm:$0xff] %vm305_vm0, %v931_v4  ;;  %v913_v7 = vsel %vm471_vm9, %v909_v63, %v911_v5  ;;  %919 = vst.msk [vmem:[#allocation4 + $0x70] sm:$0xff] %vm305_vm0, %v911_v5  ;;  %1101 = vmatpush1.bf16.msra.mxu1 %v1010_v6 }
 0x4a9   : > { %1102 = vmatprep.subr.bf16.mxu1 %v1440_v62  ;;  %1061 = vmatprep.subr.bf16.mxu0 %v913_v7  ;;  %p1371_p13 = pneg %p1370_p12 }
 0x4aa   : > { %1062 = vmatpush1.bf16.msra.mxu0 %v912_v1 }
 0x4ab   : > { %v949_v8 = vpop.permute.xlu0 %948  ;;  %v929_v9 = vpop.permute.xlu1 %928  ;;  %p1378_p2 = pnand %p1377_p0, %p1371_p13 }
 0x4ac   : > { %v952_v11 = vsel %vm513_vm11, %v947_v49, %v949_v8  ;;  %v932_v12 = vsel %vm1889_vm1, %v927_v50, %v929_v9  ;;  %v933_v13 = vsel %vm1890_vm2, %v929_v9, %v931_v4  ;;  %1103 = vmatpush1.bf16.msra.mxu1 %v1013_v10 }
 0x4ad   : > { %1104 = vmatprep.subr.bf16.mxu1 %v1440_v62  ;;  %1063 = vmatprep.subr.bf16.mxu0 %v933_v13 }
 0x4ae   : > { %1064 = vmatpush1.bf16.msra.mxu0 %v932_v12 }
 0x4af   : > { %v971_v14 = vpop.permute.xlu0 %970  ;;  %v951_v15 = vpop.permute.xlu1 %950  ;;  %v1016_v16 = vld [vmem:[#allocation4 + $0x70] sm:$0xff]  ;;  %v1019_v21 = vld [vmem:[#allocation4 + $0x88] sm:$0xff] }
 0x4b0   : > { %979 = vst.msk [vmem:[#allocation4 + $0xb8] sm:$0xff] %vm305_vm0, %v971_v14  ;;  %v953_v17 = vsel %vm513_vm11, %v949_v8, %v951_v15  ;;  %959 = vst.msk [vmem:[#allocation4 + $0xa0] sm:$0xff] %vm305_vm0, %v951_v15  ;;  %1105 = vmatpush1.bf16.msra.mxu1 %v1016_v16 }
 0x4b1   : > { %1106 = vmatprep.subr.bf16.mxu1 %v1440_v62  ;;  %1065 = vmatprep.subr.bf16.mxu0 %v953_v17 }
 0x4b2   : > { %1066 = vmatpush1.bf16.msra.mxu0 %v952_v11 }
 0x4b3   : > { %v989_v18 = vpop.permute.xlu0 %988  ;;  %v969_v20 = vpop.permute.xlu1 %968 }
 0x4b4   : > { %v972_v22 = vsel %vm1891_vm3, %v967_v52, %v969_v20  ;;  %v973_v23 = vsel %vm1892_vm4, %v969_v20, %v971_v14  ;;  %1107 = vmatpush1.bf16.msra.mxu1 %v1019_v21 }
 0x4b5   : > { %1108 = vmatprep.subr.bf16.mxu1 %v1440_v62  ;;  %1067 = vmatprep.subr.bf16.mxu0 %v973_v23 }
 0x4b6   : > { %1068 = vmatpush1.bf16.msra.mxu0 %v972_v22 }
 0x4b7   : > { %v987_v25 = vpop.permute.xlu0 %986  ;;  %v991_v26 = vpop.permute.xlu1 %990  ;;  %v1022_v27 = vld [vmem:[#allocation4 + $0xa0] sm:$0xff]  ;;  %v1025_v32 = vld [vmem:[#allocation4 + $0xb8] sm:$0xff] }
 0x4b8   : > { %v992_v29 = vsel %vm1893_vm5, %v987_v25, %v989_v18  ;;  %v993_v30 = vsel %vm1894_vm6, %v989_v18, %v991_v26  ;;  %999 = vst.msk [vmem:[#allocation4 + $0xd0] sm:$0xff] %vm305_vm0, %v991_v26  ;;  %1109 = vmatpush1.bf16.msra.mxu1 %v1022_v27 }
 0x4b9   : > { %1110 = vmatprep.subr.bf16.mxu1 %v1440_v62  ;;  %1069 = vmatprep.subr.bf16.mxu0 %v993_v30 }
 0x4ba   : > { %1070 = vmatpush1.bf16.msra.mxu0 %v992_v29 }
 0x4bc   : > { %1111 = vmatpush1.bf16.msra.mxu1 %v1025_v32 }
 0x4bd   : > { %1112 = vmatprep.subr.bf16.mxu1 %v1440_v62  ;;  %1086 = vmatmul.mubr.bf16.vlgmr.msra.gmra.mrb[4].mxu0 %v1329_v31 }
 0x4bf   : > { %v1028_v34 = vld [vmem:[#allocation4 + $0xd0] sm:$0xff] }
 0x4c0   : > { %1113 = vmatpush1.bf16.msra.mxu1 %v1028_v34 }
 0x4c3   : > { %1129 = vmatmul.mubr.bf16.vlgmr.msra.gmra.mrb[4].mxu1 %v1329_v31 }
 0x4c8   : > { %v1034_v33 = vpop.permute.xlu1 %1033  ;;  %v1039_v37 = vpop.permute.xlu0 %1038 }
 0x590   : > { %v1087_v19 = vpop.f32.mrb[4].mxu0 }
 0x591   : > { %v1088_v28 = vadd.f32 %v1087_v19, %v1034_v33  ;;  %v1089_v35 = vpop.f32.mrb[5].mxu0 }
 0x592   : > { %v1090_v38 = vadd.f32 %v1089_v35, %v1034_v33  ;;  %v1091_v39 = vpop.f32.mrb[6].mxu0 }
 0x593   : > { %v1143_v41 = vadd.f32 %v1137_v24, %v1088_v28  ;;  %v1092_v42 = vadd.f32 %v1091_v39, %v1039_v37  ;;  %v1093_v62 = vpop.f32.mrb[7].mxu0 }
 0x594   : > { %v1144_v44 = vadd.f32 %v1138_v36, %v1090_v38  ;;  %v1094_v45 = vadd.f32 %v1093_v62, %v1039_v37 }
 0x595   : > { %1149 = vst [vmem:[%s296_s28] sm:$0xff] %v1143_v41  ;;  %v1146_v46 = vadd.f32 %v1140_v40, %v1092_v42 }
 0x596   : > { %v1130_v47 = vpop.f32.mrb[4].mxu1  ;;  %1150 = vst [vmem:[%s296_s28 + $0x8] sm:$0xff] %v1144_v44  ;;  %v1147_v49 = vadd.f32 %v1141_v43, %v1094_v45 }
 0x597   : > { %v1131_v50 = vadd.f32 %v1130_v47, %v1034_v33  ;;  %v1132_v51 = vpop.f32.mrb[5].mxu1  ;;  %1152 = vst [vmem:[%s296_s28 + $0x18] sm:$0xff] %v1146_v46 }
 0x598   : > { %v1133_v52 = vpop.f32.mrb[6].mxu1  ;;  %1153 = vst [vmem:[%s296_s28 + $0x20] sm:$0xff] %v1147_v49 }
 0x599   : > { %v1145_v54 = vadd.f32 %v1139_v48, %v1131_v50  ;;  %v1134_v55 = vadd.f32 %v1133_v52, %v1039_v37  ;;  %v1135_v56 = vpop.f32.mrb[7].mxu1 }
 0x59b   : > { %1151 = vst.msk [vmem:[%s296_s28 + $0x10] sm:$0xff] %vm305_vm0, %v1145_v54  ;;  %v1148_v57 = vadd.f32 %v1142_v53, %v1134_v55 }
 0x59d   : > { %1154 = vst.msk [vmem:[%s296_s28 + $0x28] sm:$0xff] %vm305_vm0, %v1148_v57 }
 0x59e   : > { %1381 = shalt.err (!%p1378_p2)
}
 0x59f   : > { %s1382_s22 = scalar_lea.hbm %s1827_s8, 768  ;;  %s1386_s17 = scalar_lea.hbm %s1879_s7, 1536 }
 0x5a0   : > { %p1383_p4 = scmp.ne.s32.totalorder %s1827_s8, %s1382_s22  ;;  %p1387_p9 = scmp.lt.u32.totalorder %s1827_s8, %s1879_s7 }
 0x5a1   : > { %p1388_p1 = scmp.lt.u32.totalorder %s1386_s17, %s1382_s22  ;;  %p1390_p6 = scmp.lt.u32.totalorder %s1382_s22, %s1827_s8 }
 0x5a2   : > { %p1384_p5 = pnand %p1383_p4, %p1896_p11 }
 0x5a3   : > { %p1389_p3 = por %p1388_p1, %p1387_p9 }
 0x5a4   : > { %p1385_p7 = pneg %p1384_p5 }
 0x5a5   : > { %p1391_p12 = por %p1390_p6, %p1389_p3 }
 0x5a7   : > { %p1392_p13 = pnand %p1391_p12, %p1385_p7 }
 0x5a9   : > { %1395 = shalt.err (!%p1392_p13)
}
 0x5aa   : > { %s1450_s23 = smov 384   ;;  %s1451_s10 = smov 24  }
 0x5ab   : > { %1264 = dma.vmem_to_hbm [thread:$0]  (%p1896_p11), %s1821_s14, 768, %s1827_s8, %s1156_s5, %s1450_s23, %s1450_s23, %s1451_s10  }
 0x5ac PF: > { %s1184_s16 = sand.u32 1, %s1422_s24   ;;  %p1897_p8 = scmp.ne.s32.totalorder %s1887_s12, 0 }
 0x5ad   : > { %p1898_p10 = scmp.ge.s32.totalorder %s1434_s27, 2  ;;  %s1185_s18 = scalar_lea.sflag [#allocation7], %s1184_s16 }
 0x5af   : > { %p1271_p0 = pnand %p1898_p10, %p1897_p8 }
 0x5b1   : > { %1417 = dma.done.wait (!%p1271_p0), %s1185_s18, 768  }
 0x5b2   : > { %1419 = vsyncadd (!%p1271_p0), %s1185_s18, 4294966528  ;;  %p20_p2 = scmp.ge.s32.totalorder %s1517_s29, 4   ;;  %s1899_s24 = smov %s1426_s25 }
 0x5b3   : > { %s1900_s25 = smov %s1430_s26  ;;  %s1901_s26 = smov %s1529_s9 }
 0x5b4   : > { %s1902_s27 = smov %s1517_s29  ;;  %22 = sbr.rel (!%p20_p2) target bundleno = 5 (0x5), region = 93 }
 0x5bb   :  { %1190 = vsyncpa [#allocation6], 1 }
 0x5bc   :  { %1192 = vsyncpa [#allocation6 + $0x1], 1 }
 0x5bd   :  { %1193 = vsyncpa [#allocation7], 1 }
 0x5be   :  { %1195 = vsyncpa [#allocation7 + $0x1], 1 }

</bundles_post_ra>
